<compile_context>
chip_gen: v7x
topology: tpu7x:2x2x1
jax: 0.10.0
libtpu: 0.0.40
codegen_flags: <defaults>
</compile_context>

<pallas_src>
import functools

import numpy as np
import jax
import jax.numpy as jnp
from jax.experimental import pallas as pl
from jax.experimental.pallas import tpu as pltpu


# ----------------------------- Pallas kernel ---------------------------------

def _repconv3x3_kernel(xp_ref, w_ref, b_ref, o_ref, *, th, w_out, approx_recip):
    """Re-parameterized 3x3 conv + bias + SiLU on one (batch, row-block) tile.

    xp_ref : (1, Hp, Wp, Cp)  zero-padded NHWC activation of the current batch element
                              (Hp = nH*th + 2 incl. conv padding, Wp = W+2 rounded to 16,
                              Cp = channels padded to a multiple of 128). Resident across
                              all row-blocks of this batch element (constant index_map).
    w_ref  : (9, Cp, Cp)      folded 3x3 taps, each (Cin, Cout), BN scales folded in.
    b_ref  : (1, Cp)          combined BN bias of the three branches (fp32).
    o_ref  : (1, th, w_out, Cp)
    """
    _, _, Wp, Cp = xp_ref.shape
    h = pl.program_id(1)
    r0 = pl.multiple_of(h * th, th)          # first padded input row of this output block

    y = jnp.zeros((th, w_out, Cp), jnp.float32)
    # dw-outer / dh-inner: a single (th*Wp, Cp) fp32 accumulator stays live, and the
    # sublane (W) shift happens only once per dw on the Co-wide result, instead of the
    # previous 9 unaligned slice+reshape copies of the input.
    for dw in range(3):
        acc = jnp.zeros((th * Wp, Cp), jnp.float32)
        for dh in range(3):
            x2d = xp_ref[0, pl.ds(r0 + dh, th), :, :].reshape(th * Wp, Cp)
            acc = acc + jnp.dot(x2d, w_ref[dh * 3 + dw],
                                preferred_element_type=jnp.float32)
        y = y + acc.reshape(th, Wp, Cp)[:, dw:dw + w_out, :]

    # Combined BN bias + SiLU (reciprocal on the EUP slot; approx when MXU path is bf16).
    y = y + b_ref[...].astype(jnp.float32).reshape(1, 1, Cp)
    y = y * pl.reciprocal(1.0 + jnp.exp(-y), approx=approx_recip)
    o_ref[0] = y.astype(o_ref.dtype)


def _repconv_pallas(xp, w9, bias, *, B, nH, th, W, Cp, approx_recip):
    Hp, Wp = xp.shape[1], xp.shape[2]
    kernel = functools.partial(_repconv3x3_kernel, th=th, w_out=W,
                               approx_recip=approx_recip)
    return pl.pallas_call(
        kernel,
        out_shape=jax.ShapeDtypeStruct((B, nH * th, W, Cp), jnp.float32),
        grid=(B, nH),
        in_specs=[
            # Whole padded image of one batch element; index is constant along the
            # row-block axis, so it is DMA'd once per batch element and stays resident.
            pl.BlockSpec((1, Hp, Wp, Cp), lambda b, h: (b, 0, 0, 0)),
            # Folded weights / bias: constant index_map -> VMEM-resident for the grid.
            pl.BlockSpec((9, Cp, Cp), lambda b, h: (0, 0, 0)),
            pl.BlockSpec((1, Cp), lambda b, h: (0, 0)),
        ],
        out_specs=pl.BlockSpec((1, th, W, Cp), lambda b, h: (b, h, 0, 0)),
        compiler_params=pltpu.CompilerParams(
            # Both grid axes are independent -> shard across TensorCores (v7x megacore).
            dimension_semantics=("parallel", "parallel"),
            # Per-block footprint is ~1-2 MiB: comfortably inside the 64 MiB v7x / 128 MiB
            # v5e-v6e VMEM even with double-buffering; cap explicitly anyway.
            vmem_limit_bytes=32 * 1024 * 1024,
        ),
    )(xp, w9, bias)


# ------------------------------ parameters -----------------------------------

def init_params(channels, key):
    """Deterministic synthetic parameters matching the PyTorch module's shapes."""
    c = channels // 2  # RepConv(in=c, out=c)
    ks = jax.random.split(key, 15)

    def bn(k0, k1, k2, k3):
        return dict(
            gamma=jax.random.uniform(k0, (c,), jnp.float32, 0.5, 1.5),
            beta=0.1 * jax.random.normal(k1, (c,), jnp.float32),
            mean=0.1 * jax.random.normal(k2, (c,), jnp.float32),
            var=jax.random.uniform(k3, (c,), jnp.float32, 0.5, 1.5),
        )

    params = dict(
        # weights stored as (Cin, Cout) / (kh, kw, Cin, Cout) for NHWC math
        w1=0.3 * jax.random.normal(ks[0], (c, c), jnp.float32),
        w2a=0.3 * jax.random.normal(ks[1], (c, c), jnp.float32),
        w2b=0.3 * jax.random.normal(ks[2], (3, 3, c, c), jnp.float32),
        w3=0.3 * jax.random.normal(ks[3], (c, c), jnp.float32),
        bn1=bn(ks[4], ks[5], ks[6], ks[7]),
        bn2=bn(ks[8], ks[9], ks[10], ks[11]),
        bn3=bn(ks[12], ks[13], ks[14], ks[4]),
    )
    return params


def _fold_bn(bn, eps=1e-5):
    scale = bn["gamma"] / jnp.sqrt(bn["var"] + eps)
    bias = bn["beta"] - bn["mean"] * scale
    return scale, bias


def _fold_repconv_weights(params):
    """Fold the three branches + their BatchNorms into one 3x3 conv (RepVGG inference fold)."""
    s1, b1 = _fold_bn(params["bn1"])
    s2, b2 = _fold_bn(params["bn2"])
    s3, b3 = _fold_bn(params["bn3"])
    # branch_1x1_3x3: conv3x3(conv1x1(x, w2a), w2b) == conv3x3(x, w2a @ w2b[k]); fold s2.
    w_eff = jnp.einsum("ij,hwjk->hwik", params["w2a"], params["w2b"],
                       precision=jax.lax.Precision.HIGHEST) * s2[None, None, None, :]
    # branch_avg: avgpool3(conv1x1(x, w3)) == conv3x3 with w3/9 at every tap; fold s3.
    w_eff = w_eff + (params["w3"] * s3[None, :])[None, None] / 9.0
    # branch_1x1: centre tap only; fold s1.
    w_eff = w_eff.at[1, 1].add(params["w1"] * s1[None, :])
    bias = b1 + b2 + b3
    return w_eff, bias   # (3, 3, Cin, Co), (Co,)


# ------------------------------ forward (wrapper) -----------------------------

@functools.partial(jax.jit, static_argnames=("groups", "mxu_dtype", "block_h"))
def srblock_forward(x, params, groups=2, mxu_dtype=jnp.float32, block_h=8):
    """x: (B, C, H, W) float32, NCHW like PyTorch."""
    B, C, H, W = x.shape
    ch = C // 2

    x1 = x[:, :ch]                                       # passthrough half
    x2_nhwc = jnp.transpose(x[:, ch:], (0, 2, 3, 1))     # RepConv half, NHWC

    w_eff, bias = _fold_repconv_weights(params)

    # Lane-dense channel padding (multiple of 128) and layout-friendly spatial padding.
    Cp = ((ch + 127) // 128) * 128
    th = min(block_h, H)
    nH = pl.cdiv(H, th)
    Hp = nH * th + 2                  # 1 conv-pad row on top, (nH*th - H + 1) rows below
    Wp = ((W + 2 + 15) // 16) * 16    # conv pad + round up to 16 (bf16 sublane packing)

    xp = jnp.pad(x2_nhwc, ((0, 0), (1, Hp - H - 1), (1, Wp - W - 1), (0, Cp - ch)))
    w9 = jnp.zeros((3, 3, Cp, Cp), jnp.float32).at[:, :, :ch, :ch].set(w_eff)
    w9 = w9.reshape(9, Cp, Cp)
    bias_p = jnp.zeros((1, Cp), jnp.float32).at[0, :ch].set(bias)

    approx = (mxu_dtype == jnp.bfloat16)
    y_pad = _repconv_pallas(xp.astype(mxu_dtype), w9.astype(mxu_dtype), bias_p,
                            B=B, nH=nH, th=th, W=W, Cp=Cp, approx_recip=approx)
    y2 = jnp.transpose(y_pad[:, :H, :, :ch], (0, 3, 1, 2))   # back to NCHW

    # TODO(synk): concat + channel shuffle is a pure index permutation, left as XLA glue;
    # for large shapes it could be fused into the kernel's out_specs index_map / NCHW store.
    out = jnp.concatenate([x1, y2], axis=1)
    out = out.reshape(B, groups, C // groups, H, W)
    out = jnp.transpose(out, (0, 2, 1, 3, 4)).reshape(B, C, H, W)
    return out.astype(x.dtype)


# ------------------------------ pure-JAX reference ----------------------------

def _ref_srblock(x, params, groups=2, eps=1e-5):
    B, C, H, W = x.shape
    ch = C // 2
    x1, x2 = x[:, :ch], x[:, ch:]
    xh = jnp.transpose(x2, (0, 2, 3, 1))  # NHWC

    def conv1x1(a, w):
        return jnp.einsum('bhwc,cd->bhwd', a, w)

    def conv3x3(a, w):
        ap = jnp.pad(a, ((0, 0), (1, 1), (1, 1), (0, 0)))
        out = jnp.zeros(a.shape[:3] + (w.shape[-1],), jnp.float32)
        for dh in range(3):
            for dw in range(3):
                out = out + jnp.einsum('bhwc,cd->bhwd', ap[:, dh:dh + H, dw:dw + W, :], w[dh, dw])
        return out

    def avgpool3(a):
        ap = jnp.pad(a, ((0, 0), (1, 1), (1, 1), (0, 0)))
        out = jnp.zeros_like(a)
        for dh in range(3):
            for dw in range(3):
                out = out + ap[:, dh:dh + H, dw:dw + W, :]
        return out / 9.0

    def bn(a, p):
        return p["gamma"] * (a - p["mean"]) / jnp.sqrt(p["var"] + eps) + p["beta"]

    y = (bn(conv1x1(xh, params["w1"]), params["bn1"])
         + bn(conv3x3(conv1x1(xh, params["w2a"]), params["w2b"]), params["bn2"])
         + bn(avgpool3(conv1x1(xh, params["w3"])), params["bn3"]))
    y = y * jax.nn.sigmoid(y)                     # SiLU
    y = jnp.transpose(y, (0, 3, 1, 2))

    out = jnp.concatenate([x1, y], axis=1)
    out = out.reshape(B, groups, C // groups, H, W)
    out = jnp.transpose(out, (0, 2, 1, 3, 4)).reshape(B, C, H, W)
    return out


# ----------------------------------- main -------------------------------------

if __name__ == "__main__":
    B, C, H, W = 2, 8, 16, 16          # channels must be divisible by 2
    key = jax.random.PRNGKey(0)
    k_x, k_p = jax.random.split(key)

    x = jax.random.normal(k_x, (B, C, H, W), jnp.float32)
    params = init_params(C, k_p)

    ref = jax.block_until_ready(_ref_srblock(x, params, groups=2))

    # fp32 MXU operands: tight numerical check of the folded single-3x3 kernel.
    out_f32 = jax.block_until_ready(
        srblock_forward(x, params, groups=2, mxu_dtype=jnp.float32))
    assert out_f32.shape == (B, C, H, W)
    np.testing.assert_allclose(np.asarray(out_f32), np.asarray(ref), rtol=1e-3, atol=1e-3)

    # bf16 MXU operands + fp32 accumulation: the v6e/v7x performance configuration.
    out_bf16 = jax.block_until_ready(
        srblock_forward(x, params, groups=2, mxu_dtype=jnp.bfloat16))
    np.testing.assert_allclose(np.asarray(out_bf16), np.asarray(ref), rtol=3e-2, atol=3e-2)

    print("KERNEL_OK")
</pallas_src>

<mosaic_0001>
module attributes {stable_mosaic.version = 11 : i64} {
  func.func @_repconv3x3_kernel(%arg0: i32, %arg1: i32, %arg2: memref<1x18x32x128xf32, #tpu.memory_space<vmem>>, %arg3: memref<9x128x128xf32, #tpu.memory_space<vmem>>, %arg4: memref<1x128xf32, #tpu.memory_space<vmem>>, %arg5: memref<1x8x16x128xf32, #tpu.memory_space<vmem>>) attributes {dimension_semantics = [#tpu.dimension_semantics<parallel>, #tpu.dimension_semantics<parallel>], iteration_bounds = array<i64: 2, 2>, scalar_prefetch = 0 : i64, scratch_operands = 0 : i64, tpu.core_type = #tpu.core_type<tc>, window_params = [{transform_indices = @transform_0, window_bounds = array<i64: 1, 18, 32, 128>}, {pipeline_mode = #tpu.pipeline_mode<synchronous>, transform_indices = @transform_1, window_bounds = array<i64: 9, 128, 128>}, {pipeline_mode = #tpu.pipeline_mode<synchronous>, transform_indices = @transform_2, window_bounds = array<i64: 1, 128>}, {transform_indices = @transform_3, window_bounds = array<i64: 1, 8, 16, 128>}]} {
    %c8_i32 = arith.constant 8 : i32
    %0 = arith.muli %arg1, %c8_i32 : i32
    %1 = tpu.assume_multiple %0, 8 : i32
    %cst = arith.constant 0.000000e+00 : f32
    %2 = vector.broadcast %cst : f32 to vector<8x16x128xf32>
    %cst_0 = arith.constant 0.000000e+00 : f32
    %3 = vector.broadcast %cst_0 : f32 to vector<256x128xf32>
    %c0_i32 = arith.constant 0 : i32
    %4 = arith.addi %1, %c0_i32 : i32
    %c0 = arith.constant 0 : index
    %5 = arith.index_cast %4 : i32 to index
    %c0_1 = arith.constant 0 : index
    %c0_2 = arith.constant 0 : index
    %6 = vector.load %arg2[%c0, %5, %c0_1, %c0_2] : memref<1x18x32x128xf32, #tpu.memory_space<vmem>>, vector<1x8x32x128xf32>
    %7 = vector.shape_cast %6 : vector<1x8x32x128xf32> to vector<8x32x128xf32>
    %8 = vector.shape_cast %7 : vector<8x32x128xf32> to vector<256x128xf32>
    %c0_3 = arith.constant 0 : index
    %c0_4 = arith.constant 0 : index
    %c0_5 = arith.constant 0 : index
    %9 = vector.load %arg3[%c0_3, %c0_4, %c0_5] : memref<9x128x128xf32, #tpu.memory_space<vmem>>, vector<1x128x128xf32>
    %10 = vector.shape_cast %9 : vector<1x128x128xf32> to vector<128x128xf32>
    %cst_6 = arith.constant dense<0.000000e+00> : vector<256x128xf32>
    %11 = tpu.matmul %8, %10, %cst_6 {dimension_numbers = #tpu.dot_dimension_numbers<[1], [0], [0], [1], [0, 0, 1, 1], [], []>} : vector<256x128xf32>, vector<128x128xf32>, vector<256x128xf32> -> vector<256x128xf32>
    %12 = arith.addf %3, %11 : vector<256x128xf32>
    %c1_i32 = arith.constant 1 : i32
    %13 = arith.addi %1, %c1_i32 : i32
    %c0_7 = arith.constant 0 : index
    %14 = arith.index_cast %13 : i32 to index
    %c0_8 = arith.constant 0 : index
    %c0_9 = arith.constant 0 : index
    %15 = vector.load %arg2[%c0_7, %14, %c0_8, %c0_9] : memref<1x18x32x128xf32, #tpu.memory_space<vmem>>, vector<1x8x32x128xf32>
    %16 = vector.shape_cast %15 : vector<1x8x32x128xf32> to vector<8x32x128xf32>
    %17 = vector.shape_cast %16 : vector<8x32x128xf32> to vector<256x128xf32>
    %c3 = arith.constant 3 : index
    %c0_10 = arith.constant 0 : index
    %c0_11 = arith.constant 0 : index
    %18 = vector.load %arg3[%c3, %c0_10, %c0_11] : memref<9x128x128xf32, #tpu.memory_space<vmem>>, vector<1x128x128xf32>
    %19 = vector.shape_cast %18 : vector<1x128x128xf32> to vector<128x128xf32>
    %cst_12 = arith.constant dense<0.000000e+00> : vector<256x128xf32>
    %20 = tpu.matmul %17, %19, %cst_12 {dimension_numbers = #tpu.dot_dimension_numbers<[1], [0], [0], [1], [0, 0, 1, 1], [], []>} : vector<256x128xf32>, vector<128x128xf32>, vector<256x128xf32> -> vector<256x128xf32>
    %21 = arith.addf %12, %20 : vector<256x128xf32>
    %c2_i32 = arith.constant 2 : i32
    %22 = arith.addi %1, %c2_i32 : i32
    %c0_13 = arith.constant 0 : index
    %23 = arith.index_cast %22 : i32 to index
    %c0_14 = arith.constant 0 : index
    %c0_15 = arith.constant 0 : index
    %24 = vector.load %arg2[%c0_13, %23, %c0_14, %c0_15] : memref<1x18x32x128xf32, #tpu.memory_space<vmem>>, vector<1x8x32x128xf32>
    %25 = vector.shape_cast %24 : vector<1x8x32x128xf32> to vector<8x32x128xf32>
    %26 = vector.shape_cast %25 : vector<8x32x128xf32> to vector<256x128xf32>
    %c6 = arith.constant 6 : index
    %c0_16 = arith.constant 0 : index
    %c0_17 = arith.constant 0 : index
    %27 = vector.load %arg3[%c6, %c0_16, %c0_17] : memref<9x128x128xf32, #tpu.memory_space<vmem>>, vector<1x128x128xf32>
    %28 = vector.shape_cast %27 : vector<1x128x128xf32> to vector<128x128xf32>
    %cst_18 = arith.constant dense<0.000000e+00> : vector<256x128xf32>
    %29 = tpu.matmul %26, %28, %cst_18 {dimension_numbers = #tpu.dot_dimension_numbers<[1], [0], [0], [1], [0, 0, 1, 1], [], []>} : vector<256x128xf32>, vector<128x128xf32>, vector<256x128xf32> -> vector<256x128xf32>
    %30 = arith.addf %21, %29 : vector<256x128xf32>
    %31 = vector.shape_cast %30 : vector<256x128xf32> to vector<8x32x128xf32>
    %32 = vector.extract_strided_slice %31 {offsets = [0, 0, 0], sizes = [8, 16, 128], strides = [1, 1, 1]} : vector<8x32x128xf32> to vector<8x16x128xf32>
    %33 = arith.addf %2, %32 : vector<8x16x128xf32>
    %cst_19 = arith.constant 0.000000e+00 : f32
    %34 = vector.broadcast %cst_19 : f32 to vector<256x128xf32>
    %c0_i32_20 = arith.constant 0 : i32
    %35 = arith.addi %1, %c0_i32_20 : i32
    %c0_21 = arith.constant 0 : index
    %36 = arith.index_cast %35 : i32 to index
    %c0_22 = arith.constant 0 : index
    %c0_23 = arith.constant 0 : index
    %37 = vector.load %arg2[%c0_21, %36, %c0_22, %c0_23] : memref<1x18x32x128xf32, #tpu.memory_space<vmem>>, vector<1x8x32x128xf32>
    %38 = vector.shape_cast %37 : vector<1x8x32x128xf32> to vector<8x32x128xf32>
    %39 = vector.shape_cast %38 : vector<8x32x128xf32> to vector<256x128xf32>
    %c1 = arith.constant 1 : index
    %c0_24 = arith.constant 0 : index
    %c0_25 = arith.constant 0 : index
    %40 = vector.load %arg3[%c1, %c0_24, %c0_25] : memref<9x128x128xf32, #tpu.memory_space<vmem>>, vector<1x128x128xf32>
    %41 = vector.shape_cast %40 : vector<1x128x128xf32> to vector<128x128xf32>
    %cst_26 = arith.constant dense<0.000000e+00> : vector<256x128xf32>
    %42 = tpu.matmul %39, %41, %cst_26 {dimension_numbers = #tpu.dot_dimension_numbers<[1], [0], [0], [1], [0, 0, 1, 1], [], []>} : vector<256x128xf32>, vector<128x128xf32>, vector<256x128xf32> -> vector<256x128xf32>
    %43 = arith.addf %34, %42 : vector<256x128xf32>
    %c1_i32_27 = arith.constant 1 : i32
    %44 = arith.addi %1, %c1_i32_27 : i32
    %c0_28 = arith.constant 0 : index
    %45 = arith.index_cast %44 : i32 to index
    %c0_29 = arith.constant 0 : index
    %c0_30 = arith.constant 0 : index
    %46 = vector.load %arg2[%c0_28, %45, %c0_29, %c0_30] : memref<1x18x32x128xf32, #tpu.memory_space<vmem>>, vector<1x8x32x128xf32>
    %47 = vector.shape_cast %46 : vector<1x8x32x128xf32> to vector<8x32x128xf32>
    %48 = vector.shape_cast %47 : vector<8x32x128xf32> to vector<256x128xf32>
    %c4 = arith.constant 4 : index
    %c0_31 = arith.constant 0 : index
    %c0_32 = arith.constant 0 : index
    %49 = vector.load %arg3[%c4, %c0_31, %c0_32] : memref<9x128x128xf32, #tpu.memory_space<vmem>>, vector<1x128x128xf32>
    %50 = vector.shape_cast %49 : vector<1x128x128xf32> to vector<128x128xf32>
    %cst_33 = arith.constant dense<0.000000e+00> : vector<256x128xf32>
    %51 = tpu.matmul %48, %50, %cst_33 {dimension_numbers = #tpu.dot_dimension_numbers<[1], [0], [0], [1], [0, 0, 1, 1], [], []>} : vector<256x128xf32>, vector<128x128xf32>, vector<256x128xf32> -> vector<256x128xf32>
    %52 = arith.addf %43, %51 : vector<256x128xf32>
    %c2_i32_34 = arith.constant 2 : i32
    %53 = arith.addi %1, %c2_i32_34 : i32
    %c0_35 = arith.constant 0 : index
    %54 = arith.index_cast %53 : i32 to index
    %c0_36 = arith.constant 0 : index
    %c0_37 = arith.constant 0 : index
    %55 = vector.load %arg2[%c0_35, %54, %c0_36, %c0_37] : memref<1x18x32x128xf32, #tpu.memory_space<vmem>>, vector<1x8x32x128xf32>
    %56 = vector.shape_cast %55 : vector<1x8x32x128xf32> to vector<8x32x128xf32>
    %57 = vector.shape_cast %56 : vector<8x32x128xf32> to vector<256x128xf32>
    %c7 = arith.constant 7 : index
    %c0_38 = arith.constant 0 : index
    %c0_39 = arith.constant 0 : index
    %58 = vector.load %arg3[%c7, %c0_38, %c0_39] : memref<9x128x128xf32, #tpu.memory_space<vmem>>, vector<1x128x128xf32>
    %59 = vector.shape_cast %58 : vector<1x128x128xf32> to vector<128x128xf32>
    %cst_40 = arith.constant dense<0.000000e+00> : vector<256x128xf32>
    %60 = tpu.matmul %57, %59, %cst_40 {dimension_numbers = #tpu.dot_dimension_numbers<[1], [0], [0], [1], [0, 0, 1, 1], [], []>} : vector<256x128xf32>, vector<128x128xf32>, vector<256x128xf32> -> vector<256x128xf32>
    %61 = arith.addf %52, %60 : vector<256x128xf32>
    %62 = vector.shape_cast %61 : vector<256x128xf32> to vector<8x32x128xf32>
    %63 = vector.extract_strided_slice %62 {offsets = [0, 1, 0], sizes = [8, 16, 128], strides = [1, 1, 1]} : vector<8x32x128xf32> to vector<8x16x128xf32>
    %64 = arith.addf %33, %63 : vector<8x16x128xf32>
    %cst_41 = arith.constant 0.000000e+00 : f32
    %65 = vector.broadcast %cst_41 : f32 to vector<256x128xf32>
    %c0_i32_42 = arith.constant 0 : i32
    %66 = arith.addi %1, %c0_i32_42 : i32
    %c0_43 = arith.constant 0 : index
    %67 = arith.index_cast %66 : i32 to index
    %c0_44 = arith.constant 0 : index
    %c0_45 = arith.constant 0 : index
    %68 = vector.load %arg2[%c0_43, %67, %c0_44, %c0_45] : memref<1x18x32x128xf32, #tpu.memory_space<vmem>>, vector<1x8x32x128xf32>
    %69 = vector.shape_cast %68 : vector<1x8x32x128xf32> to vector<8x32x128xf32>
    %70 = vector.shape_cast %69 : vector<8x32x128xf32> to vector<256x128xf32>
    %c2 = arith.constant 2 : index
    %c0_46 = arith.constant 0 : index
    %c0_47 = arith.constant 0 : index
    %71 = vector.load %arg3[%c2, %c0_46, %c0_47] : memref<9x128x128xf32, #tpu.memory_space<vmem>>, vector<1x128x128xf32>
    %72 = vector.shape_cast %71 : vector<1x128x128xf32> to vector<128x128xf32>
    %cst_48 = arith.constant dense<0.000000e+00> : vector<256x128xf32>
    %73 = tpu.matmul %70, %72, %cst_48 {dimension_numbers = #tpu.dot_dimension_numbers<[1], [0], [0], [1], [0, 0, 1, 1], [], []>} : vector<256x128xf32>, vector<128x128xf32>, vector<256x128xf32> -> vector<256x128xf32>
    %74 = arith.addf %65, %73 : vector<256x128xf32>
    %c1_i32_49 = arith.constant 1 : i32
    %75 = arith.addi %1, %c1_i32_49 : i32
    %c0_50 = arith.constant 0 : index
    %76 = arith.index_cast %75 : i32 to index
    %c0_51 = arith.constant 0 : index
    %c0_52 = arith.constant 0 : index
    %77 = vector.load %arg2[%c0_50, %76, %c0_51, %c0_52] : memref<1x18x32x128xf32, #tpu.memory_space<vmem>>, vector<1x8x32x128xf32>
    %78 = vector.shape_cast %77 : vector<1x8x32x128xf32> to vector<8x32x128xf32>
    %79 = vector.shape_cast %78 : vector<8x32x128xf32> to vector<256x128xf32>
    %c5 = arith.constant 5 : index
    %c0_53 = arith.constant 0 : index
    %c0_54 = arith.constant 0 : index
    %80 = vector.load %arg3[%c5, %c0_53, %c0_54] : memref<9x128x128xf32, #tpu.memory_space<vmem>>, vector<1x128x128xf32>
    %81 = vector.shape_cast %80 : vector<1x128x128xf32> to vector<128x128xf32>
    %cst_55 = arith.constant dense<0.000000e+00> : vector<256x128xf32>
    %82 = tpu.matmul %79, %81, %cst_55 {dimension_numbers = #tpu.dot_dimension_numbers<[1], [0], [0], [1], [0, 0, 1, 1], [], []>} : vector<256x128xf32>, vector<128x128xf32>, vector<256x128xf32> -> vector<256x128xf32>
    %83 = arith.addf %74, %82 : vector<256x128xf32>
    %c2_i32_56 = arith.constant 2 : i32
    %84 = arith.addi %1, %c2_i32_56 : i32
    %c0_57 = arith.constant 0 : index
    %85 = arith.index_cast %84 : i32 to index
    %c0_58 = arith.constant 0 : index
    %c0_59 = arith.constant 0 : index
    %86 = vector.load %arg2[%c0_57, %85, %c0_58, %c0_59] : memref<1x18x32x128xf32, #tpu.memory_space<vmem>>, vector<1x8x32x128xf32>
    %87 = vector.shape_cast %86 : vector<1x8x32x128xf32> to vector<8x32x128xf32>
    %88 = vector.shape_cast %87 : vector<8x32x128xf32> to vector<256x128xf32>
    %c8 = arith.constant 8 : index
    %c0_60 = arith.constant 0 : index
    %c0_61 = arith.constant 0 : index
    %89 = vector.load %arg3[%c8, %c0_60, %c0_61] : memref<9x128x128xf32, #tpu.memory_space<vmem>>, vector<1x128x128xf32>
    %90 = vector.shape_cast %89 : vector<1x128x128xf32> to vector<128x128xf32>
    %cst_62 = arith.constant dense<0.000000e+00> : vector<256x128xf32>
    %91 = tpu.matmul %88, %90, %cst_62 {dimension_numbers = #tpu.dot_dimension_numbers<[1], [0], [0], [1], [0, 0, 1, 1], [], []>} : vector<256x128xf32>, vector<128x128xf32>, vector<256x128xf32> -> vector<256x128xf32>
    %92 = arith.addf %83, %91 : vector<256x128xf32>
    %93 = vector.shape_cast %92 : vector<256x128xf32> to vector<8x32x128xf32>
    %94 = vector.extract_strided_slice %93 {offsets = [0, 2, 0], sizes = [8, 16, 128], strides = [1, 1, 1]} : vector<8x32x128xf32> to vector<8x16x128xf32>
    %95 = arith.addf %64, %94 : vector<8x16x128xf32>
    %c0_63 = arith.constant 0 : index
    %c0_64 = arith.constant 0 : index
    %96 = vector.load %arg4[%c0_63, %c0_64] : memref<1x128xf32, #tpu.memory_space<vmem>>, vector<1x128xf32>
    %97 = vector.shape_cast %96 : vector<1x128xf32> to vector<1x1x128xf32>
    %98 = vector.broadcast %97 : vector<1x1x128xf32> to vector<8x16x128xf32>
    %99 = arith.addf %95, %98 : vector<8x16x128xf32>
    %cst_65 = arith.constant 0.000000e+00 : f32
    %100 = vector.broadcast %cst_65 : f32 to vector<8x16x128xf32>
    %101 = arith.subf %100, %99 : vector<8x16x128xf32>
    %102 = math.exp %101 : vector<8x16x128xf32>
    %cst_66 = arith.constant 1.000000e+00 : f32
    %103 = vector.broadcast %cst_66 : f32 to vector<8x16x128xf32>
    %104 = arith.addf %103, %102 : vector<8x16x128xf32>
    %105 = tpu.reciprocal %104 : vector<8x16x128xf32> -> vector<8x16x128xf32>
    %106 = arith.mulf %99, %105 : vector<8x16x128xf32>
    %c0_67 = arith.constant 0 : index
    %c0_68 = arith.constant 0 : index
    %c0_69 = arith.constant 0 : index
    %c0_70 = arith.constant 0 : index
    %107 = vector.load %arg5[%c0_67, %c0_68, %c0_69, %c0_70] : memref<1x8x16x128xf32, #tpu.memory_space<vmem>>, vector<1x8x16x128xf32>
    %108 = vector.shape_cast %107 : vector<1x8x16x128xf32> to vector<8x16x128xf32>
    %109 = vector.shape_cast %106 : vector<8x16x128xf32> to vector<1x8x16x128xf32>
    tpu.vector_store %arg5[%c0_67, %c0_68, %c0_69, %c0_70], %109 {strides = array<i32>} : memref<1x8x16x128xf32, #tpu.memory_space<vmem>>, vector<1x8x16x128xf32>,
    return
  }
  func.func @transform_0(%arg0: i32, %arg1: i32) -> (i32, i32, i32, i32) {
    %c0_i32 = arith.constant 0 : i32
    %c0_i32_0 = arith.constant 0 : i32
    %c0_i32_1 = arith.constant 0 : i32
    %c0_i32_2 = arith.constant 0 : i32
    return %arg0, %c0_i32, %c0_i32_0, %c0_i32_1 : i32, i32, i32, i32
  }
  func.func @transform_1(%arg0: i32, %arg1: i32) -> (i32, i32, i32) {
    %c0_i32 = arith.constant 0 : i32
    %c0_i32_0 = arith.constant 0 : i32
    %c0_i32_1 = arith.constant 0 : i32
    %c0_i32_2 = arith.constant 0 : i32
    return %c0_i32, %c0_i32_0, %c0_i32_1 : i32, i32, i32
  }
  func.func @transform_2(%arg0: i32, %arg1: i32) -> (i32, i32) {
    %c0_i32 = arith.constant 0 : i32
    %c0_i32_0 = arith.constant 0 : i32
    %c0_i32_1 = arith.constant 0 : i32
    return %c0_i32, %c0_i32_0 : i32, i32
  }
  func.func @transform_3(%arg0: i32, %arg1: i32) -> (i32, i32, i32, i32) {
    %c0_i32 = arith.constant 0 : i32
    %c0_i32_0 = arith.constant 0 : i32
    %c0_i32_1 = arith.constant 0 : i32
    return %arg0, %arg1, %c0_i32, %c0_i32_0 : i32, i32, i32, i32
  }
}

</mosaic_0001>

<bundles_post_ra>
// kernel: srblock_forward.1
= control target key start
LH: loop header
LB: loop body
LE: loop exit
PB: predicated region body
PF: predicated region fallthrough
CT: control target
= control target key end

     0   :  { %s4897_s12 = smov 0   ;;  %s4899_s13 = smov 0   ;;  %s6054_s0 = inlined_call_operand.vmem [shape: f32[2,18,32,128], index: 0, kind: input, shape index: {}]   ;;  %s6055_s1 = inlined_call_operand.vmem [shape: f32[9,128,128], index: 1, kind: input, shape index: {}]   ;;  %s6056_s2 = inlined_call_operand.vmem [shape: f32[1,128], index: 2, kind: input, shape index: {}]   ;;  %s6057_s3 = inlined_call_operand.vmem [shape: f32[2,16,16,128], index: 3, kind: output, shape index: {}]  }
   0x1   :  { %s4901_s14 = smov 0   ;;  %s4903_s15 = smov 0  }
   0x2   :  { %s4905_s16 = smov 0  }
   0x3 LB: > { %s22_s17 = sadd.s32 1, %s4867_s14  ;;  %s25_s18 = sadd.s32 1, %s4871_s15  ;;  %s4875_s16 = sphi %s4905_s16, %s13_s16   ;;  %s4871_s15 = sphi %s4903_s15, %s6062_s15   ;;  %s4867_s14 = sphi %s4901_s14, %s6061_s14   ;;  %s4863_s13 = sphi %s4899_s13, %s6060_s13   ;;  %s4859_s12 = sphi %s4897_s12, %s6059_s12  }
   0x4   : > { %p23_p0 = scmp.ge.s32.totalorder %s22_s17, 2  ;;  %p2895_p1 = scmp.ge.s32.totalorder %s4875_s16, 1 }
   0x5   : > { %p151_p2 = scmp.lt.s32.totalorder %s4875_s16, 5 }
   0x6   : > { %s6064_s17 = smov (%p23_p0, %s22_s17), 0  ;;  %s6066_s18 = smov (!%p23_p0, %s25_s18), %s4871_s15 }
   0x7   : > { %p152_p3 = pnand %p2895_p1, %p151_p2  ;;  %p27_p4 = scmp.ge.s32.totalorder %s6066_s18, 2 }
   0x8   : > { %v2937_v0 = vld [vmem:[%s6055_s1 + $0x180] sm:$0xff] (!%p152_p3)  ;;  %v2938_v1 = vld [vmem:[%s6055_s1 + $0x188] sm:$0xff] (!%p152_p3)  ;;  %p180_p5 = scmp.lt.s32.totalorder (!%p152_p3), %s4863_s13, 1  ;;  %v2939_v5 = vld [vmem:[%s6055_s1 + $0x190] sm:$0xff] (!%p152_p3)  ;;  %s3102_s24 = sshll.u32 (!%p152_p3), %s4859_s12, 8  ;;  %vm1760_vm0 = vcmask (!%p152_p3), 1046528  }
   0x9   : > { %s6068_s18 = smov (%p27_p4, %s6066_s18), 0  ;;  %155 = sbr.rel (%p152_p3) target bundleno = 582 (0x246), region = 32 }
   0xa   : > { %v231_v2 = vld [vmem:[%s6055_s1] sm:$0xff] (!%p152_p3)  ;;  %v4257_v3 = vpack.c.bf16 (!%p152_p3), %v2938_v1, %v2937_v0  ;;  %v232_v4 = vld [vmem:[%s6055_s1 + $0x8] sm:$0xff] (!%p152_p3)  ;;  %v2940_v6 = vld [vmem:[%s6055_s1 + $0x198] sm:$0xff] (!%p152_p3)  ;;  %vm2583_vm1 = vcmask (!%p152_p3), 1045504   ;;  %s2897_s27 = sshll.u32 (!%p152_p3), %s4859_s12, 3 }
   0xb   : > { %v4947_v7 = vpack.c.bf16 (!%p152_p3), %v232_v4, %v231_v2  ;;  %v4261_v8 = vpack.c.bf16 (!%p152_p3), %v2940_v6, %v2939_v5  ;;  %v233_v9 = vld [vmem:[%s6055_s1 + $0x10] sm:$0xff] (!%p152_p3)  ;;  %v234_v10 = vld [vmem:[%s6055_s1 + $0x18] sm:$0xff] (!%p152_p3)  ;;  %v2941_v11 = vld [vmem:[%s6055_s1 + $0x1a0] sm:$0xff] (!%p152_p3)  ;;  %p5910_p6 = scmp.lt.s32.totalorder (!%p152_p3), %s2897_s27, 15 }
   0xc   : > { %4258 = vmatprep.subr.bf16.mxu1 (!%p152_p3), %v4257_v3  ;;  %v4960_v12 = vpack.c.bf16 (!%p152_p3), %v234_v10, %v233_v9  ;;  %v2942_v13 = vld [vmem:[%s6055_s1 + $0x1a8] sm:$0xff] (!%p152_p3)  ;;  %v235_v14 = vld [vmem:[%s6055_s1 + $0x20] sm:$0xff] (!%p152_p3)  ;;  %v2943_v18 = vld [vmem:[%s6055_s1 + $0x1b0] sm:$0xff] (!%p152_p3) }
   0xd   : > { %v236_v15 = vld [vmem:[%s6055_s1 + $0x28] sm:$0xff] (!%p152_p3)  ;;  %4290 = vmatprep.subr.bf16.mxu0 (!%p152_p3), %v4947_v7  ;;  %4260 = vmatpush3.bf16.msra.mxu1 (!%p152_p3), %v4257_v3  ;;  %v4265_v16 = vpack.c.bf16 (!%p152_p3), %v2942_v13, %v2941_v11  ;;  %v2944_v19 = vld [vmem:[%s6055_s1 + $0x1b8] sm:$0xff] (!%p152_p3)  ;;  %v237_v20 = vld [vmem:[%s6055_s1 + $0x30] sm:$0xff] (!%p152_p3) }
   0xe   : > { %4292 = vmatpush3.bf16.msra.mxu0 (!%p152_p3), %v4947_v7  ;;  %4262 = vmatprep.subr.bf16.mxu1 (!%p152_p3), %v4261_v8  ;;  %v4976_v17 = vpack.c.bf16 (!%p152_p3), %v236_v15, %v235_v14  ;;  %v238_v21 = vld [vmem:[%s6055_s1 + $0x38] sm:$0xff] (!%p152_p3)  ;;  %v4269_v22 = vpack.c.bf16 (!%p152_p3), %v2944_v19, %v2943_v18  ;;  %v2945_v24 = vld [vmem:[%s6055_s1 + $0x1c0] sm:$0xff] (!%p152_p3)  ;;  %v2946_v25 = vld [vmem:[%s6055_s1 + $0x1c8] sm:$0xff] (!%p152_p3) }
   0xf   : > { %4294 = vmatprep.subr.bf16.mxu0 (!%p152_p3), %v4960_v12  ;;  %v4997_v23 = vpack.c.bf16 (!%p152_p3), %v238_v21, %v237_v20  ;;  %v239_v27 = vld [vmem:[%s6055_s1 + $0x40] sm:$0xff] (!%p152_p3)  ;;  %v240_v28 = vld [vmem:[%s6055_s1 + $0x48] sm:$0xff] (!%p152_p3)  ;;  %v4273_v30 = vpack.c.bf16 (!%p152_p3), %v2946_v25, %v2945_v24  ;;  %v2947_v32 = vld [vmem:[%s6055_s1 + $0x1d0] sm:$0xff] (!%p152_p3) }
  0x10   : > { %s6070_s13 = smov (!%p180_p5, %s4863_s13), 1  ;;  %v5021_v31 = vpack.c.bf16 %v240_v28, %v239_v27  ;;  %v2948_v33 = vld [vmem:[%s6055_s1 + $0x1d8] sm:$0xff]  ;;  %v241_v34 = vld [vmem:[%s6055_s1 + $0x50] sm:$0xff]  ;;  %v2949_v38 = vld [vmem:[%s6055_s1 + $0x1e0] sm:$0xff]  ;;  %s6072_s27 = smov (!%p5910_p6, %s2897_s27), 15 }
  0x11   : > { %s4721_s23 = smul.u32 576, %s6070_s13  ;;  %4264 = vmatpush3.bf16.msra.mxu1 %v4261_v8  ;;  %v242_v35 = vld [vmem:[%s6055_s1 + $0x58] sm:$0xff]  ;;  %v4277_v36 = vpack.c.bf16 %v2948_v33, %v2947_v32  ;;  %v2950_v39 = vld [vmem:[%s6055_s1 + $0x1e8] sm:$0xff]  ;;  %v243_v40 = vld [vmem:[%s6055_s1 + $0x60] sm:$0xff]  ;;  %s2898_s12 = sshll.u32 %s6072_s27, 1 }
  0x12   : > { %4296 = vmatpush3.bf16.msra.mxu0 %v4960_v12  ;;  %4266 = vmatprep.subr.bf16.mxu1 %v4265_v16  ;;  %v5037_v37 = vpack.c.bf16 %v242_v35, %v241_v34  ;;  %v244_v41 = vld [vmem:[%s6055_s1 + $0x68] sm:$0xff]  ;;  %v4281_v42 = vpack.c.bf16 %v2950_v39, %v2949_v38  ;;  %v2951_v44 = vld [vmem:[%s6055_s1 + $0x1f0] sm:$0xff]  ;;  %v2952_v45 = vld [vmem:[%s6055_s1 + $0x1f8] sm:$0xff]  ;;  %s2899_s29 = sshll.u32 %s6070_s13, 5 }
  0x13   : > { %s184_s4 = scalar_lea.vmem %s6054_s0, %s4721_s23  ;;  %4298 = vmatprep.subr.bf16.mxu0 %v4976_v17  ;;  %v5053_v43 = vpack.c.bf16 %v244_v41, %v243_v40  ;;  %v245_v46 = vld [vmem:[%s6055_s1 + $0x70] sm:$0xff]  ;;  %v246_v47 = vld [vmem:[%s6055_s1 + $0x78] sm:$0xff]  ;;  %v4285_v48 = vpack.c.bf16 %v2952_v45, %v2951_v44  ;;  %v2987_v50 = vld [vmem:[%s6055_s1 + $0x300] sm:$0xff]  ;;  %s5940_s30 = sadd.s32 %s2899_s29, %s2898_s12 }
  0x14   : > { %s4993_s9 = scalar_lea.vmem %s184_s4, %s3102_s24  ;;  %v5069_v49 = vpack.c.bf16 %v246_v47, %v245_v46  ;;  %v2988_v51 = vld [vmem:[%s6055_s1 + $0x308] sm:$0xff]  ;;  %v2989_v53 = vld [vmem:[%s6055_s1 + $0x310] sm:$0xff]  ;;  %v2990_v54 = vld [vmem:[%s6055_s1 + $0x318] sm:$0xff]  ;;  %s2900_s13 = sshll.u32 %s5940_s30, 3 }
  0x15   : > { %v5006_v26 = vld [vmem:[%s4993_s9 + $0x20] sm:$0xff]  ;;  %4268 = vmatpush3.bf16.msra.mxu1 %v4265_v16  ;;  %v4321_v52 = vpack.c.bf16 %v2988_v51, %v2987_v50  ;;  %v5086_v55 = vld [vmem:[%s4993_s9 + $0x28] sm:$0xff]  ;;  %v5094_v57 = vld [vmem:[%s4993_s9 + $0x30] sm:$0xff]  ;;  %v4325_v58 = vpack.c.bf16 %v2990_v54, %v2989_v53  ;;  %s5959_s6 = scalar_lea.vmem %s6057_s3, %s2900_s13 }
  0x16   : > { %3569 = vmatprep.mubr.f32.mxu1 %v5006_v26  ;;  %v5016_v29 = vld [vmem:[%s4993_s9] sm:$0xff]  ;;  %4300 = vmatpush3.bf16.msra.mxu0 %v4976_v17  ;;  %v5091_v56 = vld [vmem:[%s4993_s9 + $0x8] sm:$0xff]  ;;  %v5098_v59 = vld [vmem:[%s4993_s9 + $0x10] sm:$0xff] }
  0x17   : > { %3649 = vmatprep.mubr.f32.mxu0 %v5016_v29  ;;  %4270 = vmatprep.subr.bf16.mxu1 %v4269_v22  ;;  %v2991_v60 = vld [vmem:[%s6055_s1 + $0x320] sm:$0xff]  ;;  %v2992_v61 = vld [vmem:[%s6055_s1 + $0x328] sm:$0xff]  ;;  %v5109_v62 = vld [vmem:[%s4993_s9 + $0x38] sm:$0xff] }
  0x18   : > { %4302 = vmatprep.subr.bf16.mxu0 %v4997_v23  ;;  %v5113_v63 = vld [vmem:[%s4993_s9 + $0x18] sm:$0xff]  ;;  %v5116_v0 = vld [vmem:[%s4993_s9 + $0x40] sm:$0xff]  ;;  %v4329_v1 = vpack.c.bf16 %v2992_v61, %v2991_v60  ;;  %v2993_v2 = vld [vmem:[%s6055_s1 + $0x330] sm:$0xff] }
  0x19   : > { %4272 = vmatpush3.bf16.msra.mxu1 %v4269_v22  ;;  %v2994_v3 = vld [vmem:[%s6055_s1 + $0x338] sm:$0xff]  ;;  %v5130_v4 = vld [vmem:[%s4993_s9 + $0x48] sm:$0xff]  ;;  %v5134_v5 = vld [vmem:[%s4993_s9 + $0x50] sm:$0xff] }
  0x1a   : > { %4304 = vmatpush3.bf16.msra.mxu0 %v4997_v23  ;;  %4274 = vmatprep.subr.bf16.mxu1 %v4273_v30  ;;  %v4333_v6 = vpack.c.bf16 %v2994_v3, %v2993_v2  ;;  %v2996_v8 = vld [vmem:[%s6055_s1 + $0x348] sm:$0xff]  ;;  %v5148_v9 = vld [vmem:[%s4993_s9 + $0x58] sm:$0xff]  ;;  %v5152_v10 = vld [vmem:[%s4993_s9 + $0x60] sm:$0xff] }
  0x1b   : > { %4306 = vmatprep.subr.bf16.mxu0 %v5021_v31  ;;  %v2998_v13 = vld [vmem:[%s6055_s1 + $0x358] sm:$0xff]  ;;  %v5166_v14 = vld [vmem:[%s4993_s9 + $0x68] sm:$0xff]  ;;  %v5170_v15 = vld [vmem:[%s4993_s9 + $0x70] sm:$0xff] }
  0x1c   : > { %v3000_v18 = vld [vmem:[%s6055_s1 + $0x368] sm:$0xff]  ;;  %v5184_v19 = vld [vmem:[%s4993_s9 + $0x78] sm:$0xff]  ;;  %v5188_v20 = vld [vmem:[%s4993_s9 + $0x80] sm:$0xff] }
  0x1d   : > { %4276 = vmatpush3.bf16.msra.mxu1 %v4273_v30  ;;  %v3001_v22 = vld [vmem:[%s6055_s1 + $0x370] sm:$0xff]  ;;  %v5202_v24 = vld [vmem:[%s4993_s9 + $0x88] sm:$0xff]  ;;  %v3067_v28 = vld [vmem:[%s6055_s1 + $0x280] sm:$0xff] }
  0x1e   : > { %4308 = vmatpush3.bf16.msra.mxu0 %v5021_v31  ;;  %4278 = vmatprep.subr.bf16.mxu1 %v4277_v36  ;;  %v5206_v25 = vld [vmem:[%s4993_s9 + $0x90] sm:$0xff]  ;;  %v3068_v30 = vld [vmem:[%s6055_s1 + $0x288] sm:$0xff]  ;;  %v3019_v32 = vld [vmem:[%s6055_s1 + $0x200] sm:$0xff] }
  0x1f   : > { %4310 = vmatprep.subr.bf16.mxu0 %v5037_v37  ;;  %v3020_v33 = vld [vmem:[%s6055_s1 + $0x208] sm:$0xff]  ;;  %v5230_v34 = vld [vmem:[%s4993_s9 + $0xa0] sm:$0xff]  ;;  %v4449_v35 = vpack.c.bf16 %v3068_v30, %v3067_v28  ;;  %v5250_v40 = vld [vmem:[%s4993_s9 + $0xb0] sm:$0xff] }
  0x20   : > { %v5241_v38 = vpack.c.bf16 %v3020_v33, %v3019_v32  ;;  %v5246_v39 = vld [vmem:[%s4993_s9 + $0xa8] sm:$0xff]  ;;  %v5264_v44 = vld [vmem:[%s4993_s9 + $0xb8] sm:$0xff]  ;;  %v5268_v45 = vld [vmem:[%s4993_s9 + $0xc0] sm:$0xff] }
  0x21   : > { %4280 = vmatpush3.bf16.msra.mxu1 %v4277_v36  ;;  %v3069_v36 = vld [vmem:[%s6055_s1 + $0x290] sm:$0xff]  ;;  %v3076_v53 = vld [vmem:[%s6055_s1 + $0x2c8] sm:$0xff]  ;;  %v5296_v54 = vld [vmem:[%s4993_s9 + $0xd8] sm:$0xff] }
  0x22   : > { %4312 = vmatpush3.bf16.msra.mxu0 %v5037_v37  ;;  %4282 = vmatprep.subr.bf16.mxu1 %v4281_v42  ;;  %v3073_v47 = vld [vmem:[%s6055_s1 + $0x2b0] sm:$0xff]  ;;  %v5312_v2 = vld [vmem:[%s4993_s9 + $0xe8] sm:$0xff]  ;;  %v5360_v28 = vld [vmem:[%s4993_s9 + $0x118] sm:$0xff] }
  0x23   : > { %4314 = vmatprep.subr.bf16.mxu0 %v5053_v43  ;;  %v5284_v50 = vld [vmem:[%s4993_s9 + $0xd0] sm:$0xff]  ;;  %v3022_v33 = vld [vmem:[%s6055_s1 + $0x218] sm:$0xff] }
  0x24   : > { %v3077_v61 = vld [vmem:[%s6055_s1 + $0x2d0] sm:$0xff] }
  0x25   : > { %4284 = vmatpush3.bf16.msra.mxu1 %v4281_v42  ;;  %v3071_v42 = vld [vmem:[%s6055_s1 + $0x2a0] sm:$0xff]  ;;  %v5316_v3 = vld [vmem:[%s4993_s9 + $0xf0] sm:$0xff] }
  0x26   : > { %4316 = vmatpush3.bf16.msra.mxu0 %v5053_v43  ;;  %4286 = vmatprep.subr.bf16.mxu1 %v4285_v48  ;;  %v3021_v32 = vld [vmem:[%s6055_s1 + $0x210] sm:$0xff] }
  0x27   : > { %4318 = vmatprep.subr.bf16.mxu0 %v5069_v49 }
  0x29   : > { %4288 = vmatpush3.bf16.msra.mxu1 %v4285_v48  ;;  %v3074_v48 = vld [vmem:[%s6055_s1 + $0x2b8] sm:$0xff] }
  0x2a   : > { %4320 = vmatpush3.bf16.msra.mxu0 %v5069_v49  ;;  %4545 = vmatprep.subr.bf16.mxu1 %v4947_v7  ;;  %v4461_v51 = vpack.c.bf16 %v3074_v48, %v3073_v47  ;;  %v3028_v47 = vld [vmem:[%s6055_s1 + $0x248] sm:$0xff] }
  0x2b   : > { %4322 = vmatprep.subr.bf16.mxu0 %v4321_v52 }
  0x2c   : > { %3570 = vmatmul.mubr.f32.vlgmr.msra.gmra.mrb[0].mxu1 %v5086_v55 }
  0x2d   : > { %3650 = vmatmul.mubr.f32.vlgmr.msra.gmra.mrb[0].mxu0 %v5091_v56  ;;  %4553 = vmatpush3.bf16.msra.mxu1 %v4947_v7  ;;  %v2995_v7 = vld [vmem:[%s6055_s1 + $0x340] sm:$0xff] }
  0x2e   : > { %4324 = vmatpush3.bf16.msra.mxu0 %v4321_v52  ;;  %3572 = vmatprep.mubr.f32.mxu1 %v5094_v57  ;;  %v4337_v11 = vpack.c.bf16 %v2996_v8, %v2995_v7  ;;  %v3075_v52 = vld [vmem:[%s6055_s1 + $0x2c0] sm:$0xff]  ;;  %v3080_v8 = vld [vmem:[%s6055_s1 + $0x2e8] sm:$0xff] }
  0x2f   : > { %3652 = vmatprep.mubr.f32.mxu0 %v5098_v59  ;;  %4326 = vmatprep.subr.bf16.mxu0 %v4325_v58  ;;  %v4465_v60 = vpack.c.bf16 %v3076_v53, %v3075_v52  ;;  %v3079_v7 = vld [vmem:[%s6055_s1 + $0x2e0] sm:$0xff]  ;;  %v3030_v52 = vld [vmem:[%s6055_s1 + $0x258] sm:$0xff] }
  0x30   : > { %3573 = vmatmul.mubr.f32.gmra.mrb[2].mxu1 %v5109_v62  ;;  %4546 = vmatprep.subr.bf16.mxu1 %v4960_v12 }
  0x31   : > { %3653 = vmatmul.mubr.f32.gmra.mrb[2].mxu0 %v5113_v63  ;;  %3575 = vmatprep.mubr.f32.mxu1 %v5116_v0 }
  0x32   : > { %4328 = vmatpush3.bf16.msra.mxu0 %v4325_v58  ;;  %3655 = vmatprep.mubr.f32.mxu0 %v5006_v26  ;;  %v5300_v58 = vld [vmem:[%s4993_s9 + $0xe0] sm:$0xff] }
  0x33   : > { %4330 = vmatprep.subr.bf16.mxu0 %v4329_v1  ;;  %4554 = vmatpush3.bf16.msra.mxu1 %v4960_v12  ;;  %v2997_v12 = vld [vmem:[%s6055_s1 + $0x350] sm:$0xff] }
  0x34   : > { %3576 = vmatmul.mubr.f32.gmra.mrb[4].mxu1 %v5130_v4  ;;  %4547 = vmatprep.subr.bf16.mxu1 %v4976_v17  ;;  %v4341_v16 = vpack.c.bf16 %v2998_v13, %v2997_v12  ;;  %v5332_v12 = vld [vmem:[%s4993_s9 + $0x100] sm:$0xff]  ;;  %v4473_v13 = vpack.c.bf16 %v3080_v8, %v3079_v7  ;;  %v3033_v7 = vld [vmem:[%s6055_s1 + $0x270] sm:$0xff]  ;;  %v3034_v8 = vld [vmem:[%s6055_s1 + $0x278] sm:$0xff] }
  0x35   : > { %3656 = vmatmul.mubr.f32.gmra.mrb[4].mxu0 %v5086_v55  ;;  %3578 = vmatprep.mubr.f32.mxu1 %v5134_v5 }
  0x36   : > { %4332 = vmatpush3.bf16.msra.mxu0 %v4329_v1  ;;  %3658 = vmatprep.mubr.f32.mxu0 %v5094_v57  ;;  %v3078_v1 = vld [vmem:[%s6055_s1 + $0x2d8] sm:$0xff] }
  0x37   : > { %4334 = vmatprep.subr.bf16.mxu0 %v4333_v6  ;;  %4555 = vmatpush3.bf16.msra.mxu1 %v4976_v17  ;;  %v2999_v17 = vld [vmem:[%s6055_s1 + $0x360] sm:$0xff] }
  0x38   : > { %3579 = vmatmul.mubr.f32.gmra.mrb[6].mxu1 %v5148_v9  ;;  %4548 = vmatprep.subr.bf16.mxu1 %v4997_v23  ;;  %v4345_v21 = vpack.c.bf16 %v3000_v18, %v2999_v17  ;;  %v3082_v17 = vld [vmem:[%s6055_s1 + $0x2f8] sm:$0xff]  ;;  %v5344_v18 = vld [vmem:[%s4993_s9 + $0x108] sm:$0xff] }
  0x39   : > { %3659 = vmatmul.mubr.f32.gmra.mrb[6].mxu0 %v5109_v62  ;;  %3581 = vmatprep.mubr.f32.mxu1 %v5152_v10 }
  0x3a   : > { %4336 = vmatpush3.bf16.msra.mxu0 %v4333_v6  ;;  %3661 = vmatprep.mubr.f32.mxu0 %v5116_v0  ;;  %v4469_v6 = vpack.c.bf16 %v3078_v1, %v3077_v61  ;;  %v3032_v61 = vld [vmem:[%s6055_s1 + $0x268] sm:$0xff]  ;;  %v5428_v1 = vld [vmem:[%s4993_s9 + $0x120] sm:$0xff] }
  0x3b   : > { %4338 = vmatprep.subr.bf16.mxu0 %v4337_v11  ;;  %4556 = vmatpush3.bf16.msra.mxu1 %v4997_v23  ;;  %v3002_v23 = vld [vmem:[%s6055_s1 + $0x378] sm:$0xff] }
  0x3c   : > { %3582 = vmatmul.mubr.f32.gmra.mrb[8].mxu1 %v5166_v14  ;;  %4549 = vmatprep.subr.bf16.mxu1 %v5021_v31  ;;  %v4349_v27 = vpack.c.bf16 %v3002_v23, %v3001_v22  ;;  %v3051_v23 = vld [vmem:[%s6055_s1 + $0x100] sm:$0xff] }
  0x3d   : > { %3662 = vmatmul.mubr.f32.gmra.mrb[8].mxu0 %v5130_v4  ;;  %3584 = vmatprep.mubr.f32.mxu1 %v5170_v15 }
  0x3e   : > { %4340 = vmatpush3.bf16.msra.mxu0 %v4337_v11  ;;  %3664 = vmatprep.mubr.f32.mxu0 %v5134_v5  ;;  %v5328_v11 = vld [vmem:[%s4993_s9 + $0xf8] sm:$0xff] }
  0x3f   : > { %4342 = vmatprep.subr.bf16.mxu0 %v4341_v16  ;;  %4557 = vmatpush3.bf16.msra.mxu1 %v5021_v31  ;;  %v5220_v31 = vld [vmem:[%s4993_s9 + $0x98] sm:$0xff] }
  0x40   : > { %3585 = vmatmul.mubr.f32.gmra.mrb[10].mxu1 %v5184_v19  ;;  %4550 = vmatprep.subr.bf16.mxu1 %v5037_v37 }
  0x41   : > { %3665 = vmatmul.mubr.f32.gmra.mrb[10].mxu0 %v5148_v9  ;;  %3587 = vmatprep.mubr.f32.mxu1 %v5188_v20 }
  0x42   : > { %4344 = vmatpush3.bf16.msra.mxu0 %v4341_v16  ;;  %3667 = vmatprep.mubr.f32.mxu0 %v5152_v10  ;;  %v3081_v16 = vld [vmem:[%s6055_s1 + $0x2f0] sm:$0xff] }
  0x43   : > { %4346 = vmatprep.subr.bf16.mxu0 %v4345_v21  ;;  %4558 = vmatpush3.bf16.msra.mxu1 %v5037_v37  ;;  %v3070_v37 = vld [vmem:[%s6055_s1 + $0x298] sm:$0xff]  ;;  %v4477_v22 = vpack.c.bf16 %v3082_v17, %v3081_v16  ;;  %v5444_v16 = vld [vmem:[%s4993_s9 + $0x130] sm:$0xff]  ;;  %v4381_v17 = vpack.c.bf16 %v3034_v8, %v3033_v7  ;;  %v3011_v7 = vld [vmem:[%s6055_s1 + $0xc0] sm:$0xff] }
  0x44   : > { %3588 = vmatmul.mubr.f32.gmra.mrb[12].mxu1 %v5202_v24  ;;  %4551 = vmatprep.subr.bf16.mxu1 %v5053_v43  ;;  %v4453_v41 = vpack.c.bf16 %v3070_v37, %v3069_v36  ;;  %v3023_v36 = vld [vmem:[%s6055_s1 + $0x220] sm:$0xff]  ;;  %v3024_v37 = vld [vmem:[%s6055_s1 + $0x228] sm:$0xff] }
  0x45   : > { %3668 = vmatmul.mubr.f32.gmra.mrb[12].mxu0 %v5166_v14  ;;  %3590 = vmatprep.mubr.f32.mxu1 %v5206_v25  ;;  %v3012_v8 = vld [vmem:[%s6055_s1 + $0xc8] sm:$0xff] }
  0x46   : > { %4348 = vmatpush3.bf16.msra.mxu0 %v4345_v21  ;;  %3670 = vmatprep.mubr.f32.mxu0 %v5170_v15  ;;  %v5348_v21 = vld [vmem:[%s4993_s9 + $0x110] sm:$0xff] }
  0x47   : > { %4350 = vmatprep.subr.bf16.mxu0 %v4349_v27  ;;  %4559 = vmatpush3.bf16.msra.mxu1 %v5053_v43  ;;  %v3072_v43 = vld [vmem:[%s6055_s1 + $0x2a8] sm:$0xff] }
  0x48   : > { %3591 = vmatmul.mubr.f32.gmra.mrb[14].mxu1 %v5220_v31  ;;  %4552 = vmatprep.subr.bf16.mxu1 %v5069_v49  ;;  %v4457_v46 = vpack.c.bf16 %v3072_v43, %v3071_v42  ;;  %v3025_v42 = vld [vmem:[%s6055_s1 + $0x230] sm:$0xff]  ;;  %v3026_v43 = vld [vmem:[%s6055_s1 + $0x238] sm:$0xff] }
  0x49   : > { %3671 = vmatmul.mubr.f32.gmra.mrb[14].mxu0 %v5184_v19  ;;  %3593 = vmatprep.mubr.f32.mxu1 %v5230_v34 }
  0x4a   : > { %4352 = vmatpush3.bf16.msra.mxu0 %v4349_v27  ;;  %3729 = vmatprep.mubr.f32.mxu0 %v5116_v0  ;;  %v3052_v27 = vld [vmem:[%s6055_s1 + $0x108] sm:$0xff] }
  0x4b   : > { %4450 = vmatprep.subr.bf16.mxu0 %v4449_v35  ;;  %4560 = vmatpush3.bf16.msra.mxu1 %v5069_v49  ;;  %v5280_v49 = vld [vmem:[%s4993_s9 + $0xc8] sm:$0xff]  ;;  %v5363_v30 = vpack.c.bf16 %v3052_v27, %v3051_v23  ;;  %v5457_v27 = vld [vmem:[%s4993_s9 + $0x138] sm:$0xff] }
  0x4c   : > { %3594 = vmatmul.mubr.f32.gmra.mrb[16].mxu1 %v5246_v39  ;;  %4354 = vmatprep.subr.bf16.mxu1 %v5241_v38  ;;  %v3004_v23 = vld [vmem:[%s6055_s1 + $0x88] sm:$0xff] }
  0x4d   : > { %3730 = vmatmul.mubr.f32.vlgmr.msra.gmra.mrb[0].mxu0 %v5130_v4  ;;  %3596 = vmatprep.mubr.f32.mxu1 %v5250_v40 }
  0x4e   : > { %3732 = vmatprep.mubr.f32.mxu0 %v5134_v5  ;;  %4452 = vmatpush3.bf16.msra.mxu0 %v4449_v35  ;;  %v4357_v35 = vpack.c.bf16 %v3022_v33, %v3021_v32  ;;  %v3005_v33 = vld [vmem:[%s6055_s1 + $0x90] sm:$0xff] }
  0x4f   : > { %4454 = vmatprep.subr.bf16.mxu0 %v4453_v41 }
  0x50   : > { %3597 = vmatmul.mubr.f32.gmra.mrb[18].mxu1 %v5264_v44 }
  0x51   : > { %3733 = vmatmul.mubr.f32.gmra.mrb[16].mxu0 %v5148_v9  ;;  %3599 = vmatprep.mubr.f32.mxu1 %v5268_v45 }
  0x52   : > { %3735 = vmatprep.mubr.f32.mxu0 %v5152_v10  ;;  %4456 = vmatpush3.bf16.msra.mxu0 %v4453_v41  ;;  %v4361_v41 = vpack.c.bf16 %v3024_v37, %v3023_v36  ;;  %v3053_v36 = vld [vmem:[%s6055_s1 + $0x110] sm:$0xff]  ;;  %v3054_v37 = vld [vmem:[%s6055_s1 + $0x118] sm:$0xff] }
  0x53   : > { %4458 = vmatprep.subr.bf16.mxu0 %v4457_v46 }
  0x54   : > { %3600 = vmatmul.mubr.f32.gmra.mrb[20].mxu1 %v5280_v49 }
  0x55   : > { %3736 = vmatmul.mubr.f32.gmra.mrb[4].mxu0 %v5166_v14  ;;  %3602 = vmatprep.mubr.f32.mxu1 %v5284_v50 }
  0x56   : > { %3738 = vmatprep.mubr.f32.mxu0 %v5170_v15  ;;  %4460 = vmatpush3.bf16.msra.mxu0 %v4457_v46  ;;  %v3027_v46 = vld [vmem:[%s6055_s1 + $0x240] sm:$0xff] }
  0x57   : > { %4462 = vmatprep.subr.bf16.mxu0 %v4461_v51  ;;  %v4369_v48 = vpack.c.bf16 %v3028_v47, %v3027_v46  ;;  %v3055_v46 = vld [vmem:[%s6055_s1 + $0x120] sm:$0xff]  ;;  %v3056_v47 = vld [vmem:[%s6055_s1 + $0x128] sm:$0xff] }
  0x58   : > { %3603 = vmatmul.mubr.f32.gmra.mrb[22].mxu1 %v5296_v54 }
  0x59   : > { %3739 = vmatmul.mubr.f32.gmra.mrb[18].mxu0 %v5184_v19  ;;  %3605 = vmatprep.mubr.f32.mxu1 %v5300_v58 }
  0x5a   : > { %3741 = vmatprep.mubr.f32.mxu0 %v5188_v20  ;;  %4464 = vmatpush3.bf16.msra.mxu0 %v4461_v51  ;;  %v3029_v51 = vld [vmem:[%s6055_s1 + $0x250] sm:$0xff] }
  0x5b   : > { %4466 = vmatprep.subr.bf16.mxu0 %v4465_v60  ;;  %v4373_v53 = vpack.c.bf16 %v3030_v52, %v3029_v51  ;;  %v4489_v51 = vpack.c.bf16 %v3056_v47, %v3055_v46  ;;  %v3009_v52 = vld [vmem:[%s6055_s1 + $0xb0] sm:$0xff]  ;;  %v3063_v46 = vld [vmem:[%s6055_s1 + $0x160] sm:$0xff]  ;;  %v3064_v47 = vld [vmem:[%s6055_s1 + $0x168] sm:$0xff] }
  0x5c   : > { %3606 = vmatmul.mubr.f32.gmra.mrb[24].mxu1 %v5312_v2 }
  0x5d   : > { %3742 = vmatmul.mubr.f32.gmra.mrb[8].mxu0 %v5202_v24  ;;  %3608 = vmatprep.mubr.f32.mxu1 %v5316_v3 }
  0x5e   : > { %3744 = vmatprep.mubr.f32.mxu0 %v5206_v25  ;;  %4468 = vmatpush3.bf16.msra.mxu0 %v4465_v60  ;;  %v3031_v60 = vld [vmem:[%s6055_s1 + $0x260] sm:$0xff] }
  0x5f   : > { %4470 = vmatprep.subr.bf16.mxu0 %v4469_v6 }
  0x60   : > { %3609 = vmatmul.mubr.f32.gmra.mrb[26].mxu1 %v5328_v11 }
  0x61   : > { %3745 = vmatmul.mubr.f32.gmra.mrb[20].mxu0 %v5220_v31  ;;  %3611 = vmatprep.mubr.f32.mxu1 %v5332_v12 }
  0x62   : > { %3747 = vmatprep.mubr.f32.mxu0 %v5230_v34  ;;  %4472 = vmatpush3.bf16.msra.mxu0 %v4469_v6  ;;  %v4377_v6 = vpack.c.bf16 %v3032_v61, %v3031_v60  ;;  %v3058_v60 = vld [vmem:[%s6055_s1 + $0x138] sm:$0xff] }
  0x63   : > { %4474 = vmatprep.subr.bf16.mxu0 %v4473_v13 }
  0x64   : > { %3612 = vmatmul.mubr.f32.gmra.mrb[28].mxu1 %v5344_v18 }
  0x65   : > { %3748 = vmatmul.mubr.f32.gmra.mrb[12].mxu0 %v5246_v39  ;;  %3614 = vmatprep.mubr.f32.mxu1 %v5348_v21 }
  0x66   : > { %3750 = vmatprep.mubr.f32.mxu0 %v5250_v40  ;;  %4476 = vmatpush3.bf16.msra.mxu0 %v4473_v13  ;;  %v5441_v13 = vld [vmem:[%s4993_s9 + $0x128] sm:$0xff] }
  0x67   : > { %4478 = vmatprep.subr.bf16.mxu0 %v4477_v22 }
  0x68   : > { %3615 = vmatmul.mubr.f32.gmra.mrb[30].mxu1 %v5360_v28 }
  0x69   : > { %3751 = vmatmul.mubr.f32.gmra.mrb[22].mxu0 %v5264_v44  ;;  %3673 = vmatprep.mubr.f32.mxu1 %v5188_v20 }
  0x6a   : > { %3753 = vmatprep.mubr.f32.mxu0 %v5268_v45  ;;  %4480 = vmatpush3.bf16.msra.mxu0 %v4477_v22  ;;  %v3003_v22 = vld [vmem:[%s6055_s1 + $0x80] sm:$0xff] }
  0x6b   : > { %4482 = vmatprep.subr.bf16.mxu0 %v5363_v30  ;;  %v4385_v32 = vpack.c.bf16 %v3004_v23, %v3003_v22  ;;  %v3060_v22 = vld [vmem:[%s6055_s1 + $0x148] sm:$0xff]  ;;  %v4401_v23 = vpack.c.bf16 %v3012_v8, %v3011_v7  ;;  %v3035_v7 = vld [vmem:[%s6055_s1 + $0x380] sm:$0xff] }
  0x6c   : > { %3674 = vmatmul.mubr.f32.vlgmr.msra.gmra.mrb[16].mxu1 %v5202_v24  ;;  %v3036_v8 = vld [vmem:[%s6055_s1 + $0x388] sm:$0xff] }
  0x6d   : > { %3754 = vmatmul.mubr.f32.gmra.mrb[24].mxu0 %v5280_v49  ;;  %4356 = vmatpush3.bf16.msra.mxu1 %v5241_v38  ;;  %v4365_v38 = vpack.c.bf16 %v3026_v43, %v3025_v42  ;;  %v4485_v42 = vpack.c.bf16 %v3054_v37, %v3053_v36  ;;  %v3007_v43 = vld [vmem:[%s6055_s1 + $0xa0] sm:$0xff]  ;;  %v3061_v36 = vld [vmem:[%s6055_s1 + $0x150] sm:$0xff]  ;;  %v3062_v37 = vld [vmem:[%s6055_s1 + $0x158] sm:$0xff] }
  0x6e   : > { %3676 = vmatprep.mubr.f32.mxu1 %v5206_v25  ;;  %3756 = vmatprep.mubr.f32.mxu0 %v5284_v50 }
  0x6f   : > { %4358 = vmatprep.subr.bf16.mxu1 %v4357_v35 }
  0x70   : > { %3677 = vmatmul.mubr.f32.gmra.mrb[32].mxu1 %v5220_v31 }
  0x71   : > { %3757 = vmatmul.mubr.f32.gmra.mrb[26].mxu0 %v5296_v54  ;;  %4360 = vmatpush3.bf16.msra.mxu1 %v4357_v35  ;;  %v3006_v35 = vld [vmem:[%s6055_s1 + $0x98] sm:$0xff] }
  0x72   : > { %3679 = vmatprep.mubr.f32.mxu1 %v5230_v34  ;;  %3759 = vmatprep.mubr.f32.mxu0 %v5300_v58 }
  0x73   : > { %4362 = vmatprep.subr.bf16.mxu1 %v4361_v41 }
  0x74   : > { %3680 = vmatmul.mubr.f32.gmra.mrb[20].mxu1 %v5246_v39 }
  0x75   : > { %3760 = vmatmul.mubr.f32.gmra.mrb[28].mxu0 %v5312_v2  ;;  %4364 = vmatpush3.bf16.msra.mxu1 %v4361_v41  ;;  %v4389_v41 = vpack.c.bf16 %v3006_v35, %v3005_v33  ;;  %v3013_v33 = vld [vmem:[%s6055_s1 + $0xd0] sm:$0xff]  ;;  %v3014_v35 = vld [vmem:[%s6055_s1 + $0xd8] sm:$0xff] }
  0x76   : > { %3682 = vmatprep.mubr.f32.mxu1 %v5250_v40  ;;  %3762 = vmatprep.mubr.f32.mxu0 %v5316_v3 }
  0x77   : > { %4366 = vmatprep.subr.bf16.mxu1 %v4365_v38 }
  0x78   : > { %3683 = vmatmul.mubr.f32.gmra.mrb[34].mxu1 %v5264_v44 }
  0x79   : > { %3763 = vmatmul.mubr.f32.gmra.mrb[30].mxu0 %v5328_v11  ;;  %4368 = vmatpush3.bf16.msra.mxu1 %v4365_v38  ;;  %v3008_v38 = vld [vmem:[%s6055_s1 + $0xa8] sm:$0xff] }
  0x7a   : > { %3685 = vmatprep.mubr.f32.mxu1 %v5268_v45  ;;  %3765 = vmatprep.mubr.f32.mxu0 %v5332_v12 }
  0x7b   : > { %4370 = vmatprep.subr.bf16.mxu1 %v4369_v48 }
  0x7c   : > { %3686 = vmatmul.mubr.f32.gmra.mrb[24].mxu1 %v5280_v49 }
  0x7d   : > { %3766 = vmatmul.mubr.f32.gmra.mrb[32].mxu0 %v5344_v18  ;;  %4372 = vmatpush3.bf16.msra.mxu1 %v4369_v48  ;;  %v4393_v48 = vpack.c.bf16 %v3008_v38, %v3007_v43  ;;  %v3015_v43 = vld [vmem:[%s6055_s1 + $0xe0] sm:$0xff]  ;;  %v3016_v38 = vld [vmem:[%s6055_s1 + $0xe8] sm:$0xff] }
  0x7e   : > { %3688 = vmatprep.mubr.f32.mxu1 %v5284_v50  ;;  %3768 = vmatprep.mubr.f32.mxu0 %v5348_v21 }
  0x7f   : > { %4374 = vmatprep.subr.bf16.mxu1 %v4373_v53 }
  0x80   : > { %3689 = vmatmul.mubr.f32.gmra.mrb[36].mxu1 %v5296_v54 }
  0x81   : > { %3769 = vmatmul.mubr.f32.gmra.mrb[34].mxu0 %v5360_v28  ;;  %4376 = vmatpush3.bf16.msra.mxu1 %v4373_v53  ;;  %v3010_v53 = vld [vmem:[%s6055_s1 + $0xb8] sm:$0xff] }
  0x82   : > { %3691 = vmatprep.mubr.f32.mxu1 %v5300_v58  ;;  %3771 = vmatprep.mubr.f32.mxu0 %v5428_v1  ;;  %v4397_v61 = vpack.c.bf16 %v3010_v53, %v3009_v52  ;;  %v3017_v52 = vld [vmem:[%s6055_s1 + $0xf0] sm:$0xff]  ;;  %v3018_v53 = vld [vmem:[%s6055_s1 + $0xf8] sm:$0xff] }
  0x83   : > { %4378 = vmatprep.subr.bf16.mxu1 %v4377_v6 }
  0x84   : > { %3692 = vmatmul.mubr.f32.gmra.mrb[28].mxu1 %v5312_v2 }
  0x85   : > { %3772 = vmatmul.mubr.f32.gmra.mrb[36].mxu0 %v5441_v13  ;;  %4380 = vmatpush3.bf16.msra.mxu1 %v4377_v6 }
  0x86   : > { %3694 = vmatprep.mubr.f32.mxu1 %v5316_v3  ;;  %3774 = vmatprep.mubr.f32.mxu0 %v5444_v16 }
  0x87   : > { %4382 = vmatprep.subr.bf16.mxu1 %v4381_v17 }
  0x88   : > { %3695 = vmatmul.mubr.f32.gmra.mrb[38].mxu1 %v5328_v11 }
  0x89   : > { %3775 = vmatmul.mubr.f32.gmra.mrb[38].mxu0 %v5457_v27  ;;  %4384 = vmatpush3.bf16.msra.mxu1 %v4381_v17  ;;  %v3059_v17 = vld [vmem:[%s6055_s1 + $0x140] sm:$0xff] }
  0x8a   : > { %3809 = vmatprep.mubr.f32.mxu1 %v5006_v26  ;;  %4049 = vmatprep.mubr.f32.mxu0 %v5006_v26 }
  0x8b   : > { %4386 = vmatprep.subr.bf16.mxu1 %v4385_v32 }
  0x8c   : > { %3810 = vmatmul.mubr.f32.vlgmr.msra.gmra.mrb[40].mxu1 %v5086_v55 }
  0x8d   : > { %4050 = vmatmul.mubr.f32.vlgmr.msra.gmra.mrb[40].mxu0 %v5086_v55  ;;  %4388 = vmatpush3.bf16.msra.mxu1 %v4385_v32  ;;  %v4497_v32 = vpack.c.bf16 %v3060_v22, %v3059_v17  ;;  %v3083_v17 = vld [vmem:[%s6055_s1 + $0x400] sm:$0xff]  ;;  %v3084_v22 = vld [vmem:[%s6055_s1 + $0x408] sm:$0xff] }
  0x8e   : > { %3812 = vmatprep.mubr.f32.mxu1 %v5094_v57  ;;  %4052 = vmatprep.mubr.f32.mxu0 %v5094_v57 }
  0x8f   : > { %4484 = vmatpush3.bf16.msra.mxu0 %v5363_v30  ;;  %4390 = vmatprep.subr.bf16.mxu1 %v4389_v41  ;;  %v3057_v30 = vld [vmem:[%s6055_s1 + $0x130] sm:$0xff] }
  0x90   : > { %3813 = vmatmul.mubr.f32.gmra.mrb[42].mxu1 %v5109_v62  ;;  %4486 = vmatprep.subr.bf16.mxu0 %v4485_v42  ;;  %v4493_v6 = vpack.c.bf16 %v3058_v60, %v3057_v30  ;;  %v3065_v30 = vld [vmem:[%s6055_s1 + $0x170] sm:$0xff]  ;;  %v3066_v60 = vld [vmem:[%s6055_s1 + $0x178] sm:$0xff] }
  0x91   : > { %4053 = vmatmul.mubr.f32.gmra.mrb[42].mxu0 %v5109_v62  ;;  %3815 = vmatprep.mubr.f32.mxu1 %v5116_v0 }
  0x92   : > { %4055 = vmatprep.mubr.f32.mxu0 %v5116_v0  ;;  %4392 = vmatpush3.bf16.msra.mxu1 %v4389_v41  ;;  %v4405_v41 = vpack.c.bf16 %v3014_v35, %v3013_v33  ;;  %v3037_v33 = vld [vmem:[%s6055_s1 + $0x390] sm:$0xff]  ;;  %v3038_v35 = vld [vmem:[%s6055_s1 + $0x398] sm:$0xff] }
  0x93   : > { %4488 = vmatpush3.bf16.msra.mxu0 %v4485_v42  ;;  %4394 = vmatprep.subr.bf16.mxu1 %v4393_v48  ;;  %v4501_v42 = vpack.c.bf16 %v3062_v37, %v3061_v36  ;;  %v3085_v36 = vld [vmem:[%s6055_s1 + $0x410] sm:$0xff]  ;;  %v3086_v37 = vld [vmem:[%s6055_s1 + $0x418] sm:$0xff] }
  0x94   : > { %3816 = vmatmul.mubr.f32.gmra.mrb[44].mxu1 %v5130_v4  ;;  %4490 = vmatprep.subr.bf16.mxu0 %v4489_v51 }
  0x95   : > { %4056 = vmatmul.mubr.f32.gmra.mrb[44].mxu0 %v5130_v4  ;;  %3818 = vmatprep.mubr.f32.mxu1 %v5134_v5 }
  0x96   : > { %4058 = vmatprep.mubr.f32.mxu0 %v5134_v5  ;;  %4396 = vmatpush3.bf16.msra.mxu1 %v4393_v48  ;;  %v4409_v48 = vpack.c.bf16 %v3016_v38, %v3015_v43  ;;  %v3039_v43 = vld [vmem:[%s6055_s1 + $0x3a0] sm:$0xff]  ;;  %v3040_v38 = vld [vmem:[%s6055_s1 + $0x3a8] sm:$0xff] }
  0x97   : > { %4492 = vmatpush3.bf16.msra.mxu0 %v4489_v51  ;;  %4398 = vmatprep.subr.bf16.mxu1 %v4397_v61  ;;  %v4505_v51 = vpack.c.bf16 %v3064_v47, %v3063_v46  ;;  %v3087_v46 = vld [vmem:[%s6055_s1 + $0x420] sm:$0xff]  ;;  %v4425_v47 = vpack.c.bf16 %v3040_v38, %v3039_v43 }
  0x98   : > { %3819 = vmatmul.mubr.f32.gmra.mrb[46].mxu1 %v5148_v9  ;;  %4494 = vmatprep.subr.bf16.mxu0 %v4493_v6  ;;  %v4826_v38 = vld [vmem:[%s4993_s9 + $0x40] sm:$0xff] }
  0x99   : > { %4059 = vmatmul.mubr.f32.gmra.mrb[46].mxu0 %v5148_v9  ;;  %3821 = vmatprep.mubr.f32.mxu1 %v5152_v10 }
  0x9a   : > { %4061 = vmatprep.mubr.f32.mxu0 %v5152_v10  ;;  %4400 = vmatpush3.bf16.msra.mxu1 %v4397_v61  ;;  %v4413_v61 = vpack.c.bf16 %v3018_v53, %v3017_v52  ;;  %v3090_v52 = vld [vmem:[%s6055_s1 + $0x438] sm:$0xff] }
  0x9b   : > { %4496 = vmatpush3.bf16.msra.mxu0 %v4493_v6  ;;  %4402 = vmatprep.subr.bf16.mxu1 %v4401_v23  ;;  %v4509_v6 = vpack.c.bf16 %v3066_v60, %v3065_v30  ;;  %v3043_v30 = vld [vmem:[%s6055_s1 + $0x3c0] sm:$0xff]  ;;  %v3044_v60 = vld [vmem:[%s6055_s1 + $0x3c8] sm:$0xff] }
  0x9c   : > { %3822 = vmatmul.mubr.f32.gmra.mrb[48].mxu1 %v5166_v14  ;;  %4498 = vmatprep.subr.bf16.mxu0 %v4497_v32 }
  0x9d   : > { %4062 = vmatmul.mubr.f32.gmra.mrb[48].mxu0 %v5166_v14  ;;  %3824 = vmatprep.mubr.f32.mxu1 %v5170_v15 }
  0x9e   : > { %4064 = vmatprep.mubr.f32.mxu0 %v5170_v15  ;;  %4404 = vmatpush3.bf16.msra.mxu1 %v4401_v23  ;;  %v4417_v23 = vpack.c.bf16 %v3036_v8, %v3035_v7  ;;  %v3045_v7 = vld [vmem:[%s6055_s1 + $0x3d0] sm:$0xff]  ;;  %v3046_v8 = vld [vmem:[%s6055_s1 + $0x3d8] sm:$0xff] }
  0x9f   : > { %4500 = vmatpush3.bf16.msra.mxu0 %v4497_v32  ;;  %4406 = vmatprep.subr.bf16.mxu1 %v4405_v41  ;;  %v4513_v32 = vpack.c.bf16 %v3084_v22, %v3083_v17  ;;  %v3094_v17 = vld [vmem:[%s6055_s1 + $0x458] sm:$0xff]  ;;  %v4437_v22 = vpack.c.bf16 %v3046_v8, %v3045_v7 }
  0xa0   : > { %3825 = vmatmul.mubr.f32.gmra.mrb[50].mxu1 %v5184_v19  ;;  %4502 = vmatprep.subr.bf16.mxu0 %v4501_v42 }
  0xa1   : > { %4065 = vmatmul.mubr.f32.gmra.mrb[50].mxu0 %v5184_v19  ;;  %3827 = vmatprep.mubr.f32.mxu1 %v5188_v20 }
  0xa2   : > { %4067 = vmatprep.mubr.f32.mxu0 %v5188_v20  ;;  %4408 = vmatpush3.bf16.msra.mxu1 %v4405_v41  ;;  %v4421_v41 = vpack.c.bf16 %v3038_v35, %v3037_v33  ;;  %v3096_v33 = vld [vmem:[%s6055_s1 + $0x468] sm:$0xff] }
  0xa3   : > { %4504 = vmatpush3.bf16.msra.mxu0 %v4501_v42  ;;  %4410 = vmatprep.subr.bf16.mxu1 %v4409_v48  ;;  %v4517_v42 = vpack.c.bf16 %v3086_v37, %v3085_v36  ;;  %v3049_v36 = vld [vmem:[%s6055_s1 + $0x3f0] sm:$0xff]  ;;  %v3050_v37 = vld [vmem:[%s6055_s1 + $0x3f8] sm:$0xff] }
  0xa4   : > { %3828 = vmatmul.mubr.f32.gmra.mrb[52].mxu1 %v5202_v24  ;;  %4506 = vmatprep.subr.bf16.mxu0 %v4505_v51 }
  0xa5   : > { %4068 = vmatmul.mubr.f32.gmra.mrb[52].mxu0 %v5202_v24  ;;  %3830 = vmatprep.mubr.f32.mxu1 %v5206_v25 }
  0xa6   : > { %4070 = vmatprep.mubr.f32.mxu0 %v5206_v25  ;;  %4412 = vmatpush3.bf16.msra.mxu1 %v4409_v48  ;;  %v3041_v48 = vld [vmem:[%s6055_s1 + $0x3b0] sm:$0xff] }
  0xa7   : > { %4508 = vmatpush3.bf16.msra.mxu0 %v4505_v51  ;;  %4414 = vmatprep.subr.bf16.mxu1 %v4413_v61  ;;  %v3042_v51 = vld [vmem:[%s6055_s1 + $0x3b8] sm:$0xff] }
  0xa8   : > { %3831 = vmatmul.mubr.f32.gmra.mrb[54].mxu1 %v5220_v31  ;;  %4510 = vmatprep.subr.bf16.mxu0 %v4509_v6  ;;  %v4429_v53 = vpack.c.bf16 %v3042_v51, %v3041_v48  ;;  %v4828_v51 = vld [vmem:[%s4993_s9 + $0x50] sm:$0xff] }
  0xa9   : > { %4071 = vmatmul.mubr.f32.gmra.mrb[54].mxu0 %v5220_v31  ;;  %3833 = vmatprep.mubr.f32.mxu1 %v5230_v34 }
  0xaa   : > { %4073 = vmatprep.mubr.f32.mxu0 %v5230_v34  ;;  %4416 = vmatpush3.bf16.msra.mxu1 %v4413_v61  ;;  %v3092_v61 = vld [vmem:[%s6055_s1 + $0x448] sm:$0xff] }
  0xab   : > { %4512 = vmatpush3.bf16.msra.mxu0 %v4509_v6  ;;  %4418 = vmatprep.subr.bf16.mxu1 %v4417_v23  ;;  %v4433_v6 = vpack.c.bf16 %v3044_v60, %v3043_v30 }
  0xac   : > { %3834 = vmatmul.mubr.f32.gmra.mrb[56].mxu1 %v5246_v39  ;;  %4514 = vmatprep.subr.bf16.mxu0 %v4513_v32 }
  0xad   : > { %4074 = vmatmul.mubr.f32.gmra.mrb[56].mxu0 %v5246_v39  ;;  %3836 = vmatprep.mubr.f32.mxu1 %v5250_v40 }
  0xae   : > { %4076 = vmatprep.mubr.f32.mxu0 %v5250_v40 }
  0xb0   : > { %3837 = vmatmul.mubr.f32.gmra.mrb[58].mxu1 %v5264_v44 }
  0xb1   : > { %4077 = vmatmul.mubr.f32.gmra.mrb[58].mxu0 %v5264_v44  ;;  %3839 = vmatprep.mubr.f32.mxu1 %v5268_v45 }
  0xb2   : > { %4079 = vmatprep.mubr.f32.mxu0 %v5268_v45 }
  0xb4   : > { %3840 = vmatmul.mubr.f32.gmra.mrb[60].mxu1 %v5280_v49 }
  0xb5   : > { %4080 = vmatmul.mubr.f32.gmra.mrb[60].mxu0 %v5280_v49  ;;  %3842 = vmatprep.mubr.f32.mxu1 %v5284_v50 }
  0xb6   : > { %4082 = vmatprep.mubr.f32.mxu0 %v5284_v50 }
  0xb8   : > { %3843 = vmatmul.mubr.f32.gmra.mrb[62].mxu1 %v5296_v54 }
  0xb9   : > { %4083 = vmatmul.mubr.f32.gmra.mrb[62].mxu0 %v5296_v54  ;;  %3845 = vmatprep.mubr.f32.mxu1 %v5300_v58 }
  0xba   : > { %4085 = vmatprep.mubr.f32.mxu0 %v5300_v58 }
  0xbc   : > { %3846 = vmatmul.mubr.f32.gmra.mrb[64].mxu1 %v5312_v2 }
  0xbd   : > { %4086 = vmatmul.mubr.f32.gmra.mrb[64].mxu0 %v5312_v2  ;;  %3848 = vmatprep.mubr.f32.mxu1 %v5316_v3 }
  0xbe   : > { %4088 = vmatprep.mubr.f32.mxu0 %v5316_v3 }
  0xc0   : > { %3849 = vmatmul.mubr.f32.gmra.mrb[66].mxu1 %v5328_v11 }
  0xc1   : > { %4089 = vmatmul.mubr.f32.gmra.mrb[66].mxu0 %v5328_v11  ;;  %3851 = vmatprep.mubr.f32.mxu1 %v5332_v12 }
  0xc2   : > { %4091 = vmatprep.mubr.f32.mxu0 %v5332_v12 }
  0xc4   : > { %3852 = vmatmul.mubr.f32.gmra.mrb[68].mxu1 %v5344_v18 }
  0xc5   : > { %4092 = vmatmul.mubr.f32.gmra.mrb[68].mxu0 %v5344_v18  ;;  %3854 = vmatprep.mubr.f32.mxu1 %v5348_v21 }
  0xc6   : > { %4094 = vmatprep.mubr.f32.mxu0 %v5348_v21 }
  0xc8   : > { %3855 = vmatmul.mubr.f32.gmra.mrb[70].mxu1 %v5360_v28 }
  0xc9   : > { %4095 = vmatmul.mubr.f32.gmra.mrb[70].mxu0 %v5360_v28  ;;  %3889 = vmatprep.mubr.f32.mxu1 %v5016_v29 }
  0xca   : > { %4129 = vmatprep.mubr.f32.mxu0 %v5016_v29  ;;  %v3088_v29 = vld [vmem:[%s6055_s1 + $0x428] sm:$0xff] }
  0xcc   : > { %3890 = vmatmul.mubr.f32.vlgmr.msra.gmra.mrb[40].mxu1 %v5091_v56 }
  0xcd   : > { %4130 = vmatmul.mubr.f32.vlgmr.msra.gmra.mrb[40].mxu0 %v5091_v56  ;;  %4420 = vmatpush3.bf16.msra.mxu1 %v4417_v23  ;;  %v4521_v56 = vpack.c.bf16 %v3088_v29, %v3087_v46  ;;  %v3047_v23 = vld [vmem:[%s6055_s1 + $0x3e0] sm:$0xff] }
  0xce   : > { %3892 = vmatprep.mubr.f32.mxu1 %v5098_v59  ;;  %4132 = vmatprep.mubr.f32.mxu0 %v5098_v59  ;;  %v3089_v59 = vld [vmem:[%s6055_s1 + $0x430] sm:$0xff] }
  0xcf   : > { %4516 = vmatpush3.bf16.msra.mxu0 %v4513_v32  ;;  %4422 = vmatprep.subr.bf16.mxu1 %v4421_v41  ;;  %v3048_v32 = vld [vmem:[%s6055_s1 + $0x3e8] sm:$0xff] }
  0xd0   : > { %3893 = vmatmul.mubr.f32.gmra.mrb[42].mxu1 %v5113_v63  ;;  %4518 = vmatprep.subr.bf16.mxu0 %v4517_v42  ;;  %v4441_v35 = vpack.c.bf16 %v3048_v32, %v3047_v23  ;;  %v4835_v23 = vld [vmem:[%s4993_s9 + $0x88] sm:$0xff] }
  0xd1   : > { %4133 = vmatmul.mubr.f32.gmra.mrb[42].mxu0 %v5113_v63  ;;  %3895 = vmatprep.mubr.f32.mxu1 %v5006_v26  ;;  %v4525_v63 = vpack.c.bf16 %v3090_v52, %v3089_v59 }
  0xd2   : > { %4135 = vmatprep.mubr.f32.mxu0 %v5006_v26  ;;  %4424 = vmatpush3.bf16.msra.mxu1 %v4421_v41  ;;  %v3091_v26 = vld [vmem:[%s6055_s1 + $0x440] sm:$0xff]  ;;  %v3098_v41 = vld [vmem:[%s6055_s1 + $0x478] sm:$0xff] }
  0xd3   : > { %4520 = vmatpush3.bf16.msra.mxu0 %v4517_v42  ;;  %4426 = vmatprep.subr.bf16.mxu1 %v4425_v47  ;;  %v4445_v42 = vpack.c.bf16 %v3050_v37, %v3049_v36 }
  0xd4   : > { %3896 = vmatmul.mubr.f32.gmra.mrb[44].mxu1 %v5086_v55  ;;  %4522 = vmatprep.subr.bf16.mxu0 %v4521_v56 }
  0xd5   : > { %4136 = vmatmul.mubr.f32.gmra.mrb[44].mxu0 %v5086_v55  ;;  %3898 = vmatprep.mubr.f32.mxu1 %v5094_v57  ;;  %v4529_v55 = vpack.c.bf16 %v3092_v61, %v3091_v26  ;;  %v4831_v26 = vld [vmem:[%s4993_s9 + $0x68] sm:$0xff] }
  0xd6   : > { %4138 = vmatprep.mubr.f32.mxu0 %v5094_v57  ;;  %4428 = vmatpush3.bf16.msra.mxu1 %v4425_v47  ;;  %v3093_v57 = vld [vmem:[%s6055_s1 + $0x450] sm:$0xff]  ;;  %v4827_v47 = vld [vmem:[%s4993_s9 + $0x48] sm:$0xff] }
  0xd7   : > { %4524 = vmatpush3.bf16.msra.mxu0 %v4521_v56  ;;  %4430 = vmatprep.subr.bf16.mxu1 %v4429_v53 }
  0xd8   : > { %3899 = vmatmul.mubr.f32.gmra.mrb[46].mxu1 %v5109_v62  ;;  %4526 = vmatprep.subr.bf16.mxu0 %v4525_v63 }
  0xd9   : > { %4139 = vmatmul.mubr.f32.gmra.mrb[46].mxu0 %v5109_v62  ;;  %3901 = vmatprep.mubr.f32.mxu1 %v5116_v0  ;;  %v4533_v62 = vpack.c.bf16 %v3094_v17, %v3093_v57  ;;  %v4833_v57 = vld [vmem:[%s4993_s9 + $0x78] sm:$0xff]  ;;  %v4834_v17 = vld [vmem:[%s4993_s9 + $0x80] sm:$0xff] }
  0xda   : > { %4141 = vmatprep.mubr.f32.mxu0 %v5116_v0  ;;  %4432 = vmatpush3.bf16.msra.mxu1 %v4429_v53  ;;  %v3095_v0 = vld [vmem:[%s6055_s1 + $0x460] sm:$0xff]  ;;  %v4829_v53 = vld [vmem:[%s4993_s9 + $0x58] sm:$0xff] }
  0xdb   : > { %4528 = vmatpush3.bf16.msra.mxu0 %v4525_v63  ;;  %4434 = vmatprep.subr.bf16.mxu1 %v4433_v6  ;;  %v4830_v63 = vld [vmem:[%s4993_s9 + $0x60] sm:$0xff] }
  0xdc   : > { %3902 = vmatmul.mubr.f32.gmra.mrb[48].mxu1 %v5130_v4  ;;  %4530 = vmatprep.subr.bf16.mxu0 %v4529_v55 }
  0xdd   : > { %4142 = vmatmul.mubr.f32.gmra.mrb[48].mxu0 %v5130_v4  ;;  %3904 = vmatprep.mubr.f32.mxu1 %v5134_v5  ;;  %v4537_v4 = vpack.c.bf16 %v3096_v33, %v3095_v0  ;;  %v4836_v33 = vld [vmem:[%s4993_s9 + $0x90] sm:$0xff] }
  0xde   : > { %4144 = vmatprep.mubr.f32.mxu0 %v5134_v5  ;;  %4436 = vmatpush3.bf16.msra.mxu1 %v4433_v6  ;;  %v3097_v5 = vld [vmem:[%s6055_s1 + $0x470] sm:$0xff] }
  0xdf   : > { %4532 = vmatpush3.bf16.msra.mxu0 %v4529_v55  ;;  %4438 = vmatprep.subr.bf16.mxu1 %v4437_v22  ;;  %v4832_v55 = vld [vmem:[%s4993_s9 + $0x70] sm:$0xff] }
  0xe0   : > { %3905 = vmatmul.mubr.f32.gmra.mrb[50].mxu1 %v5148_v9  ;;  %4534 = vmatprep.subr.bf16.mxu0 %v4533_v62 }
  0xe1   : > { %4145 = vmatmul.mubr.f32.gmra.mrb[50].mxu0 %v5148_v9  ;;  %3907 = vmatprep.mubr.f32.mxu1 %v5152_v10  ;;  %v4541_v9 = vpack.c.bf16 %v3098_v41, %v3097_v5 }
  0xe2   : > { %4147 = vmatprep.mubr.f32.mxu0 %v5152_v10  ;;  %4440 = vmatpush3.bf16.msra.mxu1 %v4437_v22 }
  0xe3   : > { %4536 = vmatpush3.bf16.msra.mxu0 %v4533_v62  ;;  %4442 = vmatprep.subr.bf16.mxu1 %v4441_v35 }
  0xe4   : > { %3908 = vmatmul.mubr.f32.gmra.mrb[52].mxu1 %v5166_v14  ;;  %4538 = vmatprep.subr.bf16.mxu0 %v4537_v4 }
  0xe5   : > { %4148 = vmatmul.mubr.f32.gmra.mrb[52].mxu0 %v5166_v14  ;;  %3910 = vmatprep.mubr.f32.mxu1 %v5170_v15 }
  0xe6   : > { %4150 = vmatprep.mubr.f32.mxu0 %v5170_v15  ;;  %4444 = vmatpush3.bf16.msra.mxu1 %v4441_v35 }
  0xe7   : > { %4540 = vmatpush3.bf16.msra.mxu0 %v4537_v4  ;;  %4446 = vmatprep.subr.bf16.mxu1 %v4445_v42 }
  0xe8   : > { %3911 = vmatmul.mubr.f32.gmra.mrb[54].mxu1 %v5184_v19  ;;  %4542 = vmatprep.subr.bf16.mxu0 %v4541_v9 }
  0xe9   : > { %4151 = vmatmul.mubr.f32.gmra.mrb[54].mxu0 %v5184_v19  ;;  %3913 = vmatprep.mubr.f32.mxu1 %v5188_v20 }
  0xea   : > { %4153 = vmatprep.mubr.f32.mxu0 %v5188_v20  ;;  %4448 = vmatpush3.bf16.msra.mxu1 %v4445_v42 }
  0xeb   : > { %4544 = vmatpush3.bf16.msra.mxu0 %v4541_v9 }
  0xec   : > { %3914 = vmatmul.mubr.f32.gmra.mrb[56].mxu1 %v5202_v24 }
  0xed   : > { %4154 = vmatmul.mubr.f32.gmra.mrb[56].mxu0 %v5202_v24  ;;  %3916 = vmatprep.mubr.f32.mxu1 %v5206_v25 }
  0xee   : > { %4156 = vmatprep.mubr.f32.mxu0 %v5206_v25 }
  0xf0   : > { %3917 = vmatmul.mubr.f32.gmra.mrb[58].mxu1 %v5220_v31 }
  0xf1   : > { %4157 = vmatmul.mubr.f32.gmra.mrb[58].mxu0 %v5220_v31  ;;  %3919 = vmatprep.mubr.f32.mxu1 %v5230_v34 }
  0xf2   : > { %4159 = vmatprep.mubr.f32.mxu0 %v5230_v34 }
  0xf4   : > { %3920 = vmatmul.mubr.f32.gmra.mrb[60].mxu1 %v5246_v39 }
  0xf5   : > { %4160 = vmatmul.mubr.f32.gmra.mrb[60].mxu0 %v5246_v39  ;;  %3922 = vmatprep.mubr.f32.mxu1 %v5250_v40 }
  0xf6   : > { %4162 = vmatprep.mubr.f32.mxu0 %v5250_v40 }
  0xf8   : > { %3923 = vmatmul.mubr.f32.gmra.mrb[62].mxu1 %v5264_v44 }
  0xf9   : > { %4163 = vmatmul.mubr.f32.gmra.mrb[62].mxu0 %v5264_v44  ;;  %3925 = vmatprep.mubr.f32.mxu1 %v5268_v45 }
  0xfa   : > { %4165 = vmatprep.mubr.f32.mxu0 %v5268_v45 }
  0xfc   : > { %3926 = vmatmul.mubr.f32.gmra.mrb[64].mxu1 %v5280_v49 }
  0xfd   : > { %4166 = vmatmul.mubr.f32.gmra.mrb[64].mxu0 %v5280_v49  ;;  %3928 = vmatprep.mubr.f32.mxu1 %v5284_v50 }
  0xfe   : > { %4168 = vmatprep.mubr.f32.mxu0 %v5284_v50 }
  0xff   : > { %v5760_v10 = vpop.f32.mrb[0].mxu1 }
 0x100   : > { %v5762_v14 = vpop.f32.mrb[1].mxu1  ;;  %3929 = vmatmul.mubr.f32.gmra.mrb[66].mxu1 %v5296_v54 }
 0x101   : > { %4169 = vmatmul.mubr.f32.gmra.mrb[66].mxu0 %v5296_v54  ;;  %3931 = vmatprep.mubr.f32.mxu1 %v5300_v58 }
 0x102   : > { %4171 = vmatprep.mubr.f32.mxu0 %v5300_v58 }
 0x103   : > { %v3574_v15 = vpop.f32.mrb[2].mxu1 }
 0x104   : > { %v375_v19 = vpop.f32.mrb[3].mxu1  ;;  %3932 = vmatmul.mubr.f32.gmra.mrb[68].mxu1 %v5312_v2  ;;  %v3654_v20 = vpop.f32.mrb[2].mxu0 }
 0x105   : > { %4172 = vmatmul.mubr.f32.gmra.mrb[68].mxu0 %v5312_v2  ;;  %v584_v24 = vpop.f32.mrb[3].mxu0  ;;  %3934 = vmatprep.mubr.f32.mxu1 %v5316_v3 }
 0x106   : > { %4174 = vmatprep.mubr.f32.mxu0 %v5316_v3 }
 0x107   : > { %v5772_v25 = vpop.f32.mrb[4].mxu1 }
 0x108   : > { %v5774_v43 = vpop.f32.mrb[5].mxu1  ;;  %3935 = vmatmul.mubr.f32.gmra.mrb[70].mxu1 %v5328_v11 }
 0x109   : > { %4175 = vmatmul.mubr.f32.gmra.mrb[70].mxu0 %v5328_v11  ;;  %3969 = vmatprep.mubr.f32.mxu1 %v4826_v38 }
 0x10a   : > { %4209 = vmatprep.mubr.f32.mxu0 %v4826_v38 }
 0x10b   : > { %v3580_v46 = vpop.f32.mrb[6].mxu1 }
 0x10c   : > { %v393_v29 = vpop.f32.mrb[7].mxu1  ;;  %3970 = vmatmul.mubr.f32.vlgmr.msra.gmra.mrb[40].mxu1 %v4827_v47  ;;  %v3660_v56 = vpop.f32.mrb[6].mxu0 }
 0x10d   : > { %4210 = vmatmul.mubr.f32.vlgmr.msra.gmra.mrb[40].mxu0 %v4827_v47  ;;  %v602_v48 = vpop.f32.mrb[7].mxu0  ;;  %3972 = vmatprep.mubr.f32.mxu1 %v4828_v51 }
 0x10e   : > { %4212 = vmatprep.mubr.f32.mxu0 %v4828_v51 }
 0x10f   : > { %v5781_v59 = vpop.f32.mrb[8].mxu1 }
 0x110   : > { %v5783_v52 = vpop.f32.mrb[9].mxu1  ;;  %3973 = vmatmul.mubr.f32.gmra.mrb[42].mxu1 %v4829_v53 }
 0x111   : > { %4213 = vmatmul.mubr.f32.gmra.mrb[42].mxu0 %v4829_v53  ;;  %3975 = vmatprep.mubr.f32.mxu1 %v4830_v63 }
 0x112   : > { %4215 = vmatprep.mubr.f32.mxu0 %v4830_v63 }
 0x113   : > { %v3586_v30 = vpop.f32.mrb[10].mxu1 }
 0x114   : > { %v411_v60 = vpop.f32.mrb[11].mxu1  ;;  %3976 = vmatmul.mubr.f32.gmra.mrb[44].mxu1 %v4831_v26  ;;  %v3666_v61 = vpop.f32.mrb[10].mxu0 }
 0x115   : > { %4216 = vmatmul.mubr.f32.gmra.mrb[44].mxu0 %v4831_v26  ;;  %v620_v6 = vpop.f32.mrb[11].mxu0  ;;  %3978 = vmatprep.mubr.f32.mxu1 %v4832_v55 }
 0x116   : > { %4218 = vmatprep.mubr.f32.mxu0 %v4832_v55 }
 0x117   : > { %v5789_v7 = vpop.f32.mrb[12].mxu1 }
 0x118   : > { %v5791_v8 = vpop.f32.mrb[13].mxu1  ;;  %3979 = vmatmul.mubr.f32.gmra.mrb[46].mxu1 %v4833_v57 }
 0x119   : > { %4219 = vmatmul.mubr.f32.gmra.mrb[46].mxu0 %v4833_v57  ;;  %3981 = vmatprep.mubr.f32.mxu1 %v4834_v17 }
 0x11a   : > { %4221 = vmatprep.mubr.f32.mxu0 %v4834_v17 }
 0x11b   : > { %v3592_v22 = vpop.f32.mrb[14].mxu1 }
 0x11c   : > { %v429_v62 = vpop.f32.mrb[15].mxu1  ;;  %3982 = vmatmul.mubr.f32.gmra.mrb[48].mxu1 %v4835_v23  ;;  %v3672_v32 = vpop.f32.mrb[14].mxu0 }
 0x11d   : > { %4222 = vmatmul.mubr.f32.gmra.mrb[48].mxu0 %v4835_v23  ;;  %v638_v0 = vpop.f32.mrb[15].mxu0  ;;  %3984 = vmatprep.mubr.f32.mxu1 %v4836_v33 }
 0x11e   : > { %4224 = vmatprep.mubr.f32.mxu0 %v4836_v33 }
 0x120   : > { %v3731_v35 = vpop.f32.mrb[0].mxu0  ;;  %3985 = vmatmul.mubr.f32.gmra.mrb[50].mxu1 %v5220_v31 }
 0x121   : > { %v5799_v4 = vadd.f32 %v3731_v35, %v5760_v10  ;;  %v835_v36 = vpop.f32.mrb[1].mxu0  ;;  %4225 = vmatmul.mubr.f32.gmra.mrb[50].mxu0 %v5220_v31  ;;  %3987 = vmatprep.mubr.f32.mxu1 %v5230_v34 }
 0x122   : > { %v5804_v37 = vadd.f32 %v835_v36, %v5762_v14  ;;  %4227 = vmatprep.mubr.f32.mxu0 %v5230_v34 }
 0x123   : > { %v3598_v5 = vpop.f32.mrb[18].mxu1 }
 0x124   : > { %v447_v41 = vpop.f32.mrb[19].mxu1  ;;  %3988 = vmatmul.mubr.f32.gmra.mrb[52].mxu1 %v5246_v39  ;;  %v3734_v42 = vpop.f32.mrb[16].mxu0 }
 0x125   : > { %4228 = vmatmul.mubr.f32.gmra.mrb[52].mxu0 %v5246_v39  ;;  %v845_v9 = vpop.f32.mrb[17].mxu0  ;;  %3990 = vmatprep.mubr.f32.mxu1 %v5250_v40 }
 0x126   : > { %4230 = vmatprep.mubr.f32.mxu0 %v5250_v40 }
 0x128   : > { %v3737_v31 = vpop.f32.mrb[4].mxu0  ;;  %3991 = vmatmul.mubr.f32.gmra.mrb[54].mxu1 %v5264_v44 }
 0x129   : > { %v5813_v10 = vadd.f32 %v3737_v31, %v5772_v25  ;;  %v853_v14 = vpop.f32.mrb[5].mxu0  ;;  %4231 = vmatmul.mubr.f32.gmra.mrb[54].mxu0 %v5264_v44  ;;  %3993 = vmatprep.mubr.f32.mxu1 %v5268_v45 }
 0x12a   : > { %v5818_v34 = vadd.f32 %v853_v14, %v5774_v43  ;;  %4233 = vmatprep.mubr.f32.mxu0 %v5268_v45 }
 0x12b   : > { %v3604_v39 = vpop.f32.mrb[22].mxu1 }
 0x12c   : > { %v465_v15 = vpop.f32.mrb[23].mxu1  ;;  %3994 = vmatmul.mubr.f32.gmra.mrb[56].mxu1 %v5280_v49  ;;  %v3740_v40 = vpop.f32.mrb[18].mxu0 }
 0x12d   : > { %4234 = vmatmul.mubr.f32.gmra.mrb[56].mxu0 %v5280_v49  ;;  %v863_v19 = vpop.f32.mrb[19].mxu0  ;;  %3996 = vmatprep.mubr.f32.mxu1 %v5284_v50 }
 0x12e   : > { %4236 = vmatprep.mubr.f32.mxu0 %v5284_v50 }
 0x130   : > { %v3743_v44 = vpop.f32.mrb[8].mxu0  ;;  %3997 = vmatmul.mubr.f32.gmra.mrb[58].mxu1 %v5296_v54 }
 0x131   : > { %v5827_v20 = vadd.f32 %v3743_v44, %v5781_v59  ;;  %v871_v24 = vpop.f32.mrb[9].mxu0  ;;  %4237 = vmatmul.mubr.f32.gmra.mrb[58].mxu0 %v5296_v54  ;;  %3999 = vmatprep.mubr.f32.mxu1 %v5300_v58 }
 0x132   : > { %v5832_v45 = vadd.f32 %v871_v24, %v5783_v52  ;;  %4239 = vmatprep.mubr.f32.mxu0 %v5300_v58 }
 0x133   : > { %v3610_v49 = vpop.f32.mrb[26].mxu1 }
 0x134   : > { %v483_v25 = vpop.f32.mrb[27].mxu1  ;;  %4000 = vmatmul.mubr.f32.gmra.mrb[60].mxu1 %v5312_v2  ;;  %v3746_v50 = vpop.f32.mrb[20].mxu0 }
 0x135   : > { %4240 = vmatmul.mubr.f32.gmra.mrb[60].mxu0 %v5312_v2  ;;  %v881_v43 = vpop.f32.mrb[21].mxu0  ;;  %4002 = vmatprep.mubr.f32.mxu1 %v5316_v3 }
 0x136   : > { %4242 = vmatprep.mubr.f32.mxu0 %v5316_v3 }
 0x138   : > { %v3749_v54 = vpop.f32.mrb[12].mxu0  ;;  %4003 = vmatmul.mubr.f32.gmra.mrb[62].mxu1 %v5328_v11 }
 0x139   : > { %v5841_v38 = vadd.f32 %v3749_v54, %v5789_v7  ;;  %v889_v46 = vpop.f32.mrb[13].mxu0  ;;  %4243 = vmatmul.mubr.f32.gmra.mrb[62].mxu0 %v5328_v11  ;;  %4005 = vmatprep.mubr.f32.mxu1 %v5332_v12 }
 0x13a   : > { %v5846_v58 = vadd.f32 %v889_v46, %v5791_v8  ;;  %4245 = vmatprep.mubr.f32.mxu0 %v5332_v12 }
 0x13b   : > { %v3616_v2 = vpop.f32.mrb[30].mxu1 }
 0x13c   : > { %v501_v29 = vpop.f32.mrb[31].mxu1  ;;  %4006 = vmatmul.mubr.f32.gmra.mrb[64].mxu1 %v5344_v18  ;;  %v3752_v3 = vpop.f32.mrb[22].mxu0 }
 0x13d   : > { %4246 = vmatmul.mubr.f32.gmra.mrb[64].mxu0 %v5344_v18  ;;  %v899_v47 = vpop.f32.mrb[23].mxu0  ;;  %4008 = vmatprep.mubr.f32.mxu1 %v5348_v21  ;;  %v5885_v3 = vld [vmem:[%s6056_s2] ss:$0 sm:$0xff] }
 0x13e   : > { %4248 = vmatprep.mubr.f32.mxu0 %v5348_v21 }
 0x13f   : > { %v3675_v11 = vpop.f32.mrb[16].mxu1 }
 0x140   : > { %v3755_v56 = vpop.f32.mrb[24].mxu0  ;;  %v646_v48 = vpop.f32.mrb[17].mxu1  ;;  %4009 = vmatmul.mubr.f32.gmra.mrb[66].mxu1 %v5360_v28 }
 0x141   : > { %v5854_v51 = vadd.f32 %v3755_v56, %v3675_v11  ;;  %v907_v12 = vpop.f32.mrb[25].mxu0  ;;  %4249 = vmatmul.mubr.f32.gmra.mrb[66].mxu0 %v5360_v28  ;;  %4011 = vmatprep.mubr.f32.mxu1 %v5428_v1 }
 0x142   : > { %v5858_v59 = vadd.f32 %v907_v12, %v646_v48  ;;  %4251 = vmatprep.mubr.f32.mxu0 %v5428_v1 }
 0x143   : > { %v3678_v18 = vpop.f32.mrb[32].mxu1 }
 0x144   : > { %v656_v52 = vpop.f32.mrb[33].mxu1  ;;  %4012 = vmatmul.mubr.f32.gmra.mrb[68].mxu1 %v5441_v13  ;;  %v3758_v21 = vpop.f32.mrb[26].mxu0 }
 0x145   : > { %4252 = vmatmul.mubr.f32.gmra.mrb[68].mxu0 %v5441_v13  ;;  %v917_v53 = vpop.f32.mrb[27].mxu0  ;;  %4014 = vmatprep.mubr.f32.mxu1 %v5444_v16 }
 0x146   : > { %4254 = vmatprep.mubr.f32.mxu0 %v5444_v16 }
 0x147   : > { %v3681_v63 = vpop.f32.mrb[20].mxu1 }
 0x148   : > { %v3761_v28 = vpop.f32.mrb[28].mxu0  ;;  %v664_v30 = vpop.f32.mrb[21].mxu1  ;;  %4015 = vmatmul.mubr.f32.gmra.mrb[70].mxu1 %v5457_v27 }
 0x149   : > { %v5866_v60 = vadd.f32 %v3761_v28, %v3681_v63  ;;  %v925_v1 = vpop.f32.mrb[29].mxu0  ;;  %4255 = vmatmul.mubr.f32.gmra.mrb[70].mxu0 %v5457_v27 }
 0x14a   : > { %v5869_v26 = vadd.f32 %v925_v1, %v664_v30 }
 0x14b   : > { %v3684_v61 = vpop.f32.mrb[34].mxu1 }
 0x14c   : > { %v674_v6 = vpop.f32.mrb[35].mxu1  ;;  %v3764_v13 = vpop.f32.mrb[30].mxu0 }
 0x14d   : > { %v935_v55 = vpop.f32.mrb[31].mxu0 }
 0x14f   : > { %v3687_v7 = vpop.f32.mrb[24].mxu1 }
 0x150   : > { %v3767_v8 = vpop.f32.mrb[32].mxu0  ;;  %v682_v57 = vpop.f32.mrb[25].mxu1 }
 0x151   : > { %v5871_v16 = vadd.f32 %v3767_v8, %v3687_v7  ;;  %v943_v17 = vpop.f32.mrb[33].mxu0 }
 0x152   : > { %v5873_v22 = vadd.f32 %v943_v17, %v682_v57 }
 0x153   : > { %v3690_v62 = vpop.f32.mrb[36].mxu1 }
 0x154   : > { %v692_v23 = vpop.f32.mrb[37].mxu1  ;;  %v3770_v32 = vpop.f32.mrb[34].mxu0 }
 0x155   : > { %v953_v0 = vpop.f32.mrb[35].mxu0 }
 0x157   : > { %v3693_v33 = vpop.f32.mrb[28].mxu1 }
 0x158   : > { %v3773_v27 = vpop.f32.mrb[36].mxu0  ;;  %v700_v35 = vpop.f32.mrb[29].mxu1 }
 0x159   : > { %v5875_v36 = vadd.f32 %v3773_v27, %v3693_v33  ;;  %v961_v5 = vpop.f32.mrb[37].mxu0 }
 0x15a   : > { %v5877_v41 = vadd.f32 %v961_v5, %v700_v35 }
 0x15b   : > { %v3696_v42 = vpop.f32.mrb[38].mxu1 }
 0x15c   : > { %v710_v9 = vpop.f32.mrb[39].mxu1  ;;  %v3776_v31 = vpop.f32.mrb[38].mxu0 }
 0x15d   : > { %v971_v14 = vpop.f32.mrb[39].mxu0 }
 0x1df   : > { %v3971_v39 = vpop.f32.mrb[40].mxu1 }
 0x1e0   : > { %v1762_v15 = vrot.slane %v3971_v39, 1  ;;  %v4211_v40 = vpop.f32.mrb[40].mxu0  ;;  %v1561_v19 = vpop.f32.mrb[41].mxu1 }
 0x1e1   : > { %v2585_v44 = vrot.slane %v4211_v40, 2  ;;  %v1761_v24 = vrot.slane %v1561_v19, 1  ;;  %v2384_v49 = vpop.f32.mrb[41].mxu0 }
 0x1e2   : > { %v2584_v25 = vrot.slane %v2384_v49, 2 }
 0x1e3   : > { %v1763_v50 = vsel %vm1760_vm0, %v1761_v24, %v1762_v15  ;;  %v3974_v43 = vpop.f32.mrb[42].mxu1 }
 0x1e4   : > { %v1817_v54 = vadd.f32 %v5804_v37, %v1763_v50  ;;  %v2586_v46 = vsel %vm2583_vm1, %v2584_v25, %v2585_v44  ;;  %v4214_v2 = vpop.f32.mrb[42].mxu0  ;;  %v1571_v29 = vpop.f32.mrb[43].mxu1 }
 0x1e5   : > { %v1764_v47 = vrot.slane %v1571_v29, 1  ;;  %v2394_v11 = vpop.f32.mrb[43].mxu0 }
 0x1e6   : > { %v2640_v56 = vadd.f32 %v2586_v46, %v1817_v54  ;;  %v2587_v48 = vrot.slane %v2394_v11, 2 }
 0x1e7   : > { %v1765_v12 = vsel %vm1760_vm0, %v1762_v15, %v1764_v47  ;;  %v3977_v18 = vpop.f32.mrb[44].mxu1 }
 0x1e8   : > { %v5889_v52 = vadd.f32 %v5885_v3, %v2640_v56  ;;  %v1818_v37 = vadd.f32 %v5799_v4, %v1765_v12  ;;  %v2588_v21 = vsel %vm2583_vm1, %v2585_v44, %v2587_v48  ;;  %v1767_v53 = vrot.slane %v3977_v18, 1  ;;  %v4217_v63 = vpop.f32.mrb[44].mxu0  ;;  %v1580_v28 = vpop.f32.mrb[45].mxu1 }
 0x1e9   : > { %v2590_v30 = vrot.slane %v4217_v63, 2  ;;  %v1766_v1 = vrot.slane %v1580_v28, 1  ;;  %v2403_v61 = vpop.f32.mrb[45].mxu0 }
 0x1ea   : > { %v2679_v6 = vsub.f32 0.0, %v5889_v52  ;;  %v2641_v13 = vadd.f32 %v2588_v21, %v1818_v37  ;;  %v2589_v55 = vrot.slane %v2403_v61, 2 }
 0x1eb   : > { %v1768_v7 = vsel %vm1760_vm0, %v1766_v1, %v1767_v53  ;;  %v3980_v8 = vpop.f32.mrb[46].mxu1 }
 0x1ec   : > { %v2695_v57 = vmul.f32 1.442695, %v2679_v6  ;;  %v5896_v17 = vadd.f32 %v5885_v3, %v2641_v13  ;;  %v1819_v4 = vadd.f32 %v5818_v34, %v1768_v7  ;;  %v2591_v62 = vsel %vm2583_vm1, %v2589_v55, %v2590_v30  ;;  %v4220_v23 = vpop.f32.mrb[46].mxu0  ;;  %v1590_v32 = vpop.f32.mrb[47].mxu1 }
 0x1ed   : > { %v1769_v0 = vrot.slane %v1590_v32, 1  ;;  %v2413_v33 = vpop.f32.mrb[47].mxu0 }
 0x1ee   : > { %4762 = vpow2.f32 %v2695_v57  ;;  %v2680_v27 = vsub.f32 0.0, %v5896_v17  ;;  %v2642_v35 = vadd.f32 %v2591_v62, %v1819_v4  ;;  %v2592_v5 = vrot.slane %v2413_v33, 2 }
 0x1ef   : > { %v1770_v42 = vsel %vm1760_vm0, %v1767_v53, %v1769_v0  ;;  %v3983_v9 = vpop.f32.mrb[48].mxu1 }
 0x1f0   : > { %v2697_v31 = vmul.f32 1.442695, %v2680_v27  ;;  %v5903_v14 = vadd.f32 %v5885_v3, %v2642_v35  ;;  %v1820_v34 = vadd.f32 %v5813_v10, %v1770_v42  ;;  %v2593_v39 = vsel %vm2583_vm1, %v2590_v30, %v2592_v5  ;;  %v4223_v15 = vpop.f32.mrb[48].mxu0  ;;  %v1599_v40 = vpop.f32.mrb[49].mxu1 }
 0x1f1   : > { %v1772_v19 = vrot.slane %v3983_v9, 1  ;;  %v2595_v44 = vrot.slane %v4223_v15, 2  ;;  %v1771_v24 = vrot.slane %v1599_v40, 1  ;;  %v2422_v49 = vpop.f32.mrb[49].mxu0 }
 0x1f2   : > { %4764 = vpow2.f32 %v2697_v31  ;;  %v2681_v25 = vsub.f32 0.0, %v5903_v14  ;;  %v2643_v50 = vadd.f32 %v2593_v39, %v1820_v34  ;;  %v2594_v43 = vrot.slane %v2422_v49, 2 }
 0x1f3   : > { %v1773_v54 = vsel %vm1760_vm0, %v1771_v24, %v1772_v19  ;;  %v3986_v46 = vpop.f32.mrb[50].mxu1 }
 0x1f4   : > { %v2699_v10 = vmul.f32 1.442695, %v2681_v25  ;;  %v5915_v2 = vadd.f32 %v5885_v3, %v2643_v50  ;;  %v1821_v29 = vadd.f32 %v5832_v45, %v1773_v54  ;;  %v2596_v47 = vsel %vm2583_vm1, %v2594_v43, %v2595_v44  ;;  %v4226_v11 = vpop.f32.mrb[50].mxu0  ;;  %v1609_v56 = vpop.f32.mrb[51].mxu1 }
 0x1f5   : > { %v1774_v48 = vrot.slane %v1609_v56, 1  ;;  %v2432_v12 = vpop.f32.mrb[51].mxu0 }
 0x1f6   : > { %4766 = vpow2.f32 %v2699_v10  ;;  %v2682_v18 = vsub.f32 0.0, %v5915_v2  ;;  %v2644_v37 = vadd.f32 %v2596_v47, %v1821_v29  ;;  %v2597_v21 = vrot.slane %v2432_v12, 2 }
 0x1f7   : > { %v1775_v53 = vsel %vm1760_vm0, %v1772_v19, %v1774_v48  ;;  %v3989_v63 = vpop.f32.mrb[52].mxu1 }
 0x1f8   : > { %v4763_v28 = vpop.eup %4762  ;;  %v2701_v30 = vmul.f32 1.442695, %v2682_v18  ;;  %v5926_v45 = vadd.f32 %v5885_v3, %v2644_v37  ;;  %v1822_v1 = vadd.f32 %v5827_v20, %v1775_v53  ;;  %v2598_v61 = vsel %vm2583_vm1, %v2595_v44, %v2597_v21  ;;  %v4229_v6 = vpop.f32.mrb[52].mxu0 }
 0x1f9   : > { %v1618_v13 = vpop.f32.mrb[53].mxu1  ;;  %v2727_v55 = vadd.f32 1.0, %v4763_v28  ;;  %v1777_v7 = vrot.slane %v3989_v63, 1  ;;  %v2600_v8 = vrot.slane %v4229_v6, 2  ;;  %v2441_v4 = vpop.f32.mrb[53].mxu0 }
 0x1fa   : > { %v1776_v57 = vrot.slane %v1618_v13, 1  ;;  %4768 = vpow2.f32 %v2701_v30  ;;  %v2683_v62 = vsub.f32 0.0, %v5926_v45  ;;  %v2645_v23 = vadd.f32 %v2598_v61, %v1822_v1 }
 0x1fb   : > { %v2599_v32 = vrot.slane %v2441_v4, 2  ;;  %4770 = vrcp.f32 %v2727_v55  ;;  %v3992_v20 = vpop.f32.mrb[54].mxu1 }
 0x1fc   : > { %v1778_v0 = vsel %vm1760_vm0, %v1776_v57, %v1777_v7  ;;  %v4765_v33 = vpop.eup %4764  ;;  %v2703_v27 = vmul.f32 1.442695, %v2683_v62  ;;  %v5935_v35 = vadd.f32 %v5885_v3, %v2645_v23  ;;  %v4232_v9 = vpop.f32.mrb[54].mxu0 }
 0x1fd   : > { %v1823_v5 = vadd.f32 %v5846_v58, %v1778_v0  ;;  %v2601_v42 = vsel %vm2583_vm1, %v2599_v32, %v2600_v8  ;;  %v1628_v31 = vpop.f32.mrb[55].mxu1  ;;  %v2728_v34 = vadd.f32 1.0, %v4765_v33  ;;  %v2451_v15 = vpop.f32.mrb[55].mxu0 }
 0x1fe   : > { %v1779_v39 = vrot.slane %v1628_v31, 1  ;;  %4772 = vpow2.f32 %v2703_v27  ;;  %v2684_v40 = vsub.f32 0.0, %v5935_v35  ;;  %v2602_v44 = vrot.slane %v2451_v15, 2 }
 0x1ff   : > { %v2646_v19 = vadd.f32 %v2601_v42, %v1823_v5  ;;  %4774 = vrcp.f32 %v2728_v34  ;;  %v3995_v49 = vpop.f32.mrb[56].mxu1 }
 0x200   : > { %v1780_v24 = vsel %vm1760_vm0, %v1777_v7, %v1779_v39  ;;  %v4767_v58 = vpop.eup %4766  ;;  %v2705_v25 = vmul.f32 1.442695, %v2684_v40  ;;  %v2603_v54 = vsel %vm2583_vm1, %v2600_v8, %v2602_v44  ;;  %v4235_v46 = vpop.f32.mrb[56].mxu0  ;;  %v1782_v47 = vrot.slane %v3995_v49, 1 }
 0x201   : > { %v5944_v50 = vadd.f32 %v5885_v3, %v2646_v19  ;;  %v1824_v43 = vadd.f32 %v5841_v38, %v1780_v24  ;;  %v1637_v10 = vpop.f32.mrb[57].mxu1  ;;  %v2729_v29 = vadd.f32 1.0, %v4767_v58  ;;  %v2605_v11 = vrot.slane %v4235_v46, 2  ;;  %v2460_v48 = vpop.f32.mrb[57].mxu0 }
 0x202   : > { %v1781_v56 = vrot.slane %v1637_v10, 1  ;;  %4776 = vpow2.f32 %v2705_v25  ;;  %v2604_v37 = vrot.slane %v2460_v48, 2 }
 0x203   : > { %v2685_v12 = vsub.f32 0.0, %v5944_v50  ;;  %v2647_v18 = vadd.f32 %v2603_v54, %v1824_v43  ;;  %4778 = vrcp.f32 %v2729_v29  ;;  %v3998_v53 = vpop.f32.mrb[58].mxu1 }
 0x204   : > { %v1783_v21 = vsel %vm1760_vm0, %v1781_v56, %v1782_v47  ;;  %v4769_v38 = vpop.eup %4768  ;;  %v2606_v1 = vsel %vm2583_vm1, %v2604_v37, %v2605_v11  ;;  %v4238_v61 = vpop.f32.mrb[58].mxu0 }
 0x205   : > { %v2707_v63 = vmul.f32 1.442695, %v2685_v12  ;;  %v5952_v28 = vadd.f32 %v5885_v3, %v2647_v18  ;;  %v1825_v30 = vadd.f32 %v5858_v59, %v1783_v21  ;;  %v1647_v6 = vpop.f32.mrb[59].mxu1  ;;  %v4771_v13 = vpop.eup %4770  ;;  %v2730_v55 = vadd.f32 1.0, %v4769_v38 }
 0x206   : > { %v1784_v7 = vrot.slane %v1647_v6, 1  ;;  %v2470_v8 = vpop.f32.mrb[59].mxu0  ;;  %v2759_v57 = vmul.f32 %v4771_v13, %v5889_v52 }
 0x207   : > { %4780 = vpow2.f32 %v2707_v63  ;;  %v2686_v4 = vsub.f32 0.0, %v5952_v28  ;;  %v2648_v59 = vadd.f32 %v2606_v1, %v1825_v30  ;;  %v2607_v23 = vrot.slane %v2470_v8, 2  ;;  %v4001_v32 = vpop.f32.mrb[60].mxu1 }
 0x208   : > { %4782 = vrcp.f32 %v2730_v55  ;;  %v1785_v62 = vsel %vm1760_vm0, %v1782_v47, %v1784_v7  ;;  %v4773_v0 = vpop.eup %4772  ;;  %2775 = vst [vmem:[%s5959_s6] sm:$0xff] %v2759_v57  ;;  %v1787_v5 = vrot.slane %v4001_v32, 1  ;;  %v4241_v42 = vpop.f32.mrb[60].mxu0 }
 0x209   : > { %v2709_v20 = vmul.f32 1.442695, %v2686_v4  ;;  %v5966_v33 = vadd.f32 %v5885_v3, %v2648_v59  ;;  %v1826_v27 = vadd.f32 %v5854_v51, %v1785_v62  ;;  %v1656_v52 = vpop.f32.mrb[61].mxu1  ;;  %v4775_v9 = vpop.eup %4774  ;;  %v2731_v31 = vadd.f32 1.0, %v4773_v0 }
 0x20a   : > { %v2608_v34 = vsel %vm2583_vm1, %v2605_v11, %v2607_v23  ;;  %v2610_v39 = vrot.slane %v4241_v42, 2  ;;  %v1786_v15 = vrot.slane %v1656_v52, 1  ;;  %v2479_v40 = vpop.f32.mrb[61].mxu0  ;;  %v2760_v19 = vmul.f32 %v4775_v9, %v5896_v17 }
 0x20b   : > { %4784 = vpow2.f32 %v2709_v20  ;;  %v2687_v44 = vsub.f32 0.0, %v5966_v33  ;;  %v2649_v24 = vadd.f32 %v2608_v34, %v1826_v27  ;;  %v2609_v49 = vrot.slane %v2479_v40, 2  ;;  %v4004_v58 = vpop.f32.mrb[62].mxu1 }
 0x20c   : > { %4786 = vrcp.f32 %v2731_v31  ;;  %v1788_v51 = vsel %vm1760_vm0, %v1786_v15, %v1787_v5  ;;  %v4777_v25 = vpop.eup %4776  ;;  %2776 = vst [vmem:[%s5959_s6 + $0x8] sm:$0xff] %v2760_v19  ;;  %v4244_v10 = vpop.f32.mrb[62].mxu0 }
 0x20d   : > { %v2711_v43 = vmul.f32 1.442695, %v2687_v44  ;;  %v5975_v54 = vadd.f32 %v5885_v3, %v2649_v24  ;;  %v1827_v46 = vadd.f32 %v5869_v26, %v1788_v51  ;;  %v1666_v17 = vpop.f32.mrb[63].mxu1  ;;  %v4779_v29 = vpop.eup %4778  ;;  %v2732_v47 = vadd.f32 1.0, %v4777_v25 }
 0x20e   : > { %v2611_v11 = vsel %vm2583_vm1, %v2609_v49, %v2610_v39  ;;  %v1789_v56 = vrot.slane %v1666_v17, 1  ;;  %v2489_v48 = vpop.f32.mrb[63].mxu0  ;;  %v2761_v12 = vmul.f32 %v4779_v29, %v5903_v14 }
 0x20f   : > { %4788 = vpow2.f32 %v2711_v43  ;;  %v2688_v18 = vsub.f32 0.0, %v5975_v54  ;;  %v2650_v37 = vadd.f32 %v2611_v11, %v1827_v46  ;;  %v2612_v53 = vrot.slane %v2489_v48, 2  ;;  %v4007_v26 = vpop.f32.mrb[64].mxu1 }
 0x210   : > { %4790 = vrcp.f32 %v2732_v47  ;;  %v1790_v21 = vsel %vm1760_vm0, %v1787_v5, %v1789_v56  ;;  %2777 = vst [vmem:[%s5959_s6 + $0x10] sm:$0xff] %v2761_v12  ;;  %v1792_v61 = vrot.slane %v4007_v26, 1  ;;  %v4247_v6 = vpop.f32.mrb[64].mxu0  ;;  %v1675_v14 = vpop.f32.mrb[65].mxu1 }
 0x211   : > { %v4781_v38 = vpop.eup %4780  ;;  %v2713_v63 = vmul.f32 1.442695, %v2688_v18  ;;  %v5984_v30 = vadd.f32 %v5885_v3, %v2650_v37  ;;  %v1828_v1 = vadd.f32 %v5866_v60, %v1790_v21  ;;  %v2613_v7 = vsel %vm2583_vm1, %v2610_v39, %v2612_v53  ;;  %v2498_v4 = vpop.f32.mrb[65].mxu0 }
 0x212   : > { %v4783_v13 = vpop.eup %4782  ;;  %v2733_v55 = vadd.f32 1.0, %v4781_v38  ;;  %v2615_v8 = vrot.slane %v4247_v6, 2  ;;  %v1791_v57 = vrot.slane %v1675_v14, 1  ;;  %v2614_v32 = vrot.slane %v2498_v4, 2 }
 0x213   : > { %v2762_v59 = vmul.f32 %v4783_v13, %v5915_v2  ;;  %4792 = vpow2.f32 %v2713_v63  ;;  %v2689_v62 = vsub.f32 0.0, %v5984_v30  ;;  %v2651_v23 = vadd.f32 %v2613_v7, %v1828_v1  ;;  %v4010_v0 = vpop.f32.mrb[66].mxu1 }
 0x214   : > { %4794 = vrcp.f32 %v2733_v55  ;;  %v1793_v60 = vsel %vm1760_vm0, %v1791_v57, %v1792_v61  ;;  %v4250_v52 = vpop.f32.mrb[66].mxu0  ;;  %v1685_v2 = vpop.f32.mrb[67].mxu1  ;;  %v2616_v34 = vsel %vm2583_vm1, %v2614_v32, %v2615_v8 }
 0x215   : > { %v4785_v20 = vpop.eup %4784  ;;  %2778 = vst [vmem:[%s5959_s6 + $0x18] sm:$0xff] %v2762_v59  ;;  %v2715_v27 = vmul.f32 1.442695, %v2689_v62  ;;  %v5993_v5 = vadd.f32 %v5885_v3, %v2651_v23  ;;  %v1829_v42 = vadd.f32 %v5873_v22, %v1793_v60  ;;  %v1794_v39 = vrot.slane %v1685_v2, 1  ;;  %v2508_v15 = vpop.f32.mrb[67].mxu0 }
 0x216   : > { %v4787_v9 = vpop.eup %4786  ;;  %v2734_v31 = vadd.f32 1.0, %v4785_v20  ;;  %v2617_v51 = vrot.slane %v2508_v15, 2 }
 0x217   : > { %v2763_v40 = vmul.f32 %v4787_v9, %v5926_v45  ;;  %4796 = vpow2.f32 %v2715_v27  ;;  %v2690_v19 = vsub.f32 0.0, %v5993_v5  ;;  %v2652_v44 = vadd.f32 %v2616_v34, %v1829_v42  ;;  %v4013_v22 = vpop.f32.mrb[68].mxu1 }
 0x218   : > { %4798 = vrcp.f32 %v2734_v31  ;;  %v1795_v24 = vsel %vm1760_vm0, %v1792_v61, %v1794_v39  ;;  %v1797_v46 = vrot.slane %v4013_v22, 1  ;;  %v4253_v10 = vpop.f32.mrb[68].mxu0  ;;  %v1694_v45 = vpop.f32.mrb[69].mxu1  ;;  %v2618_v47 = vsel %vm2583_vm1, %v2615_v8, %v2617_v51 }
 0x219   : > { %v4789_v49 = vpop.eup %4788  ;;  %2779 = vst [vmem:[%s5959_s6 + $0x20] sm:$0xff] %v2763_v40  ;;  %v2717_v58 = vmul.f32 1.442695, %v2690_v19  ;;  %v6002_v25 = vadd.f32 %v5885_v3, %v2652_v44  ;;  %v1830_v43 = vadd.f32 %v5871_v16, %v1795_v24  ;;  %v2620_v11 = vrot.slane %v4253_v10, 2  ;;  %v2517_v48 = vpop.f32.mrb[69].mxu0 }
 0x21a   : > { %v4791_v17 = vpop.eup %4790  ;;  %v2735_v29 = vadd.f32 1.0, %v4789_v49  ;;  %v1796_v56 = vrot.slane %v1694_v45, 1  ;;  %v2619_v21 = vrot.slane %v2517_v48, 2 }
 0x21b   : > { %v2764_v12 = vmul.f32 %v4791_v17, %v5935_v35  ;;  %4800 = vpow2.f32 %v2717_v58  ;;  %v2691_v18 = vsub.f32 0.0, %v6002_v25  ;;  %v2653_v37 = vadd.f32 %v2618_v47, %v1830_v43  ;;  %v4016_v53 = vpop.f32.mrb[70].mxu1 }
 0x21c   : > { %4802 = vrcp.f32 %v2735_v29  ;;  %v1798_v16 = vsel %vm1760_vm0, %v1796_v56, %v1797_v46  ;;  %v4256_v61 = vpop.f32.mrb[70].mxu0  ;;  %v1704_v35 = vpop.f32.mrb[71].mxu1  ;;  %v2621_v13 = vsel %vm2583_vm1, %v2619_v21, %v2620_v11 }
 0x21d   : > { %v4793_v26 = vpop.eup %4792  ;;  %2780 = vst [vmem:[%s5959_s6 + $0x28] sm:$0xff] %v2764_v12  ;;  %v2719_v38 = vmul.f32 1.442695, %v2691_v18  ;;  %v6011_v63 = vadd.f32 %v5885_v3, %v2653_v37  ;;  %v1831_v1 = vadd.f32 %v5877_v41, %v1798_v16  ;;  %v1799_v55 = vrot.slane %v1704_v35, 1  ;;  %v2527_v7 = vpop.f32.mrb[71].mxu0 }
 0x21e   : > { %v4795_v6 = vpop.eup %4794  ;;  %v2736_v14 = vadd.f32 1.0, %v4793_v26  ;;  %v2622_v41 = vrot.slane %v2527_v7, 2 }
 0x21f   : > { %v2765_v8 = vmul.f32 %v4795_v6, %v5944_v50  ;;  %4804 = vpow2.f32 %v2719_v38  ;;  %v2692_v57 = vsub.f32 0.0, %v6011_v63  ;;  %v2654_v4 = vadd.f32 %v2621_v13, %v1831_v1 }
 0x220   : > { %4806 = vrcp.f32 %v2736_v14  ;;  %v1800_v59 = vsel %vm1760_vm0, %v1797_v46, %v1799_v55  ;;  %v2623_v50 = vsel %vm2583_vm1, %v2620_v11, %v2622_v41 }
 0x221   : > { %v4797_v62 = vpop.eup %4796  ;;  %2781 = vst [vmem:[%s5959_s6 + $0x30] sm:$0xff] %v2765_v8  ;;  %v2721_v23 = vmul.f32 1.442695, %v2692_v57  ;;  %v2677_v60 = vadd.f32 %v5885_v3, %v2654_v4  ;;  %v1832_v32 = vadd.f32 %v5875_v36, %v1800_v59 }
 0x222   : > { %v4799_v0 = vpop.eup %4798  ;;  %v2737_v20 = vadd.f32 1.0, %v4797_v62 }
 0x223   : > { %v2766_v27 = vmul.f32 %v4799_v0, %v5952_v28  ;;  %4808 = vpow2.f32 %v2721_v23  ;;  %v2693_v42 = vsub.f32 0.0, %v2677_v60  ;;  %v2655_v52 = vadd.f32 %v2623_v50, %v1832_v32 }
 0x224   : > { %4810 = vrcp.f32 %v2737_v20 }
 0x225   : > { %v4801_v2 = vpop.eup %4800  ;;  %2782 = vst [vmem:[%s5959_s6 + $0x38] sm:$0xff] %v2766_v27  ;;  %v2723_v9 = vmul.f32 1.442695, %v2693_v42  ;;  %v2678_v31 = vadd.f32 %v5885_v3, %v2655_v52 }
 0x226   : > { %v4803_v34 = vpop.eup %4802  ;;  %v2738_v39 = vadd.f32 1.0, %v4801_v2 }
 0x227   : > { %v2767_v36 = vmul.f32 %v4803_v34, %v5966_v33  ;;  %4812 = vpow2.f32 %v2723_v9  ;;  %v2694_v15 = vsub.f32 0.0, %v2678_v31 }
 0x228   : > { %4814 = vrcp.f32 %v2738_v39 }
 0x229   : > { %v4805_v28 = vpop.eup %4804  ;;  %2783 = vst [vmem:[%s5959_s6 + $0x40] sm:$0xff] %v2767_v36  ;;  %v2725_v40 = vmul.f32 1.442695, %v2694_v15 }
 0x22a   : > { %v4807_v19 = vpop.eup %4806  ;;  %v2739_v44 = vadd.f32 1.0, %v4805_v28 }
 0x22b   : > { %v2768_v24 = vmul.f32 %v4807_v19, %v5975_v54  ;;  %4816 = vpow2.f32 %v2725_v40 }
 0x22c   : > { %4818 = vrcp.f32 %v2739_v44 }
 0x22d   : > { %v4809_v3 = vpop.eup %4808  ;;  %2784 = vst [vmem:[%s5959_s6 + $0x48] sm:$0xff] %v2768_v24 }
 0x22e   : > { %v4811_v51 = vpop.eup %4810  ;;  %v2740_v22 = vadd.f32 1.0, %v4809_v3 }
 0x22f   : > { %v2769_v33 = vmul.f32 %v4811_v51, %v5984_v30 }
 0x230   : > { %4820 = vrcp.f32 %v2740_v22 }
 0x231   : > { %v4813_v49 = vpop.eup %4812  ;;  %2785 = vst [vmem:[%s5959_s6 + $0x50] sm:$0xff] %v2769_v33 }
 0x232   : > { %v4815_v58 = vpop.eup %4814  ;;  %v2741_v43 = vadd.f32 1.0, %v4813_v49 }
 0x233   : > { %v2770_v46 = vmul.f32 %v4815_v58, %v5993_v5 }
 0x234   : > { %4822 = vrcp.f32 %v2741_v43 }
 0x235   : > { %v4817_v54 = vpop.eup %4816  ;;  %2786 = vst [vmem:[%s5959_s6 + $0x58] sm:$0xff] %v2770_v46 }
 0x236   : > { %v4819_v10 = vpop.eup %4818  ;;  %v2742_v45 = vadd.f32 1.0, %v4817_v54 }
 0x237   : > { %v2771_v17 = vmul.f32 %v4819_v10, %v6002_v25 }
 0x238   : > { %4824 = vrcp.f32 %v2742_v45 }
 0x239   : > { %2787 = vst [vmem:[%s5959_s6 + $0x60] sm:$0xff] %v2771_v17 }
 0x23a   : > { %v4821_v30 = vpop.eup %4820 }
 0x23b   : > { %v2772_v29 = vmul.f32 %v4821_v30, %v6011_v63 }
 0x23d   : > { %2788 = vst [vmem:[%s5959_s6 + $0x68] sm:$0xff] %v2772_v29 }
 0x23e   : > { %v4823_v47 = vpop.eup %4822 }
 0x23f   : > { %v2773_v11 = vmul.f32 %v4823_v47, %v2677_v60 }
 0x241   : > { %2789 = vst [vmem:[%s5959_s6 + $0x70] sm:$0xff] %v2773_v11 }
 0x242   : > { %v4825_v56 = vpop.eup %4824 }
 0x243   : > { %v2774_v48 = vmul.f32 %v4825_v56, %v2678_v31 }
 0x245   : > { %2790 = vst [vmem:[%s5959_s6 + $0x78] sm:$0xff] %v2774_v48 }
 0x246 PF: > { %s13_s16 = sadd.s32 1, %s4875_s16   ;;  %s6059_s12 = smov %s4867_s14 }
 0x247   : > { %p10_p7 = scmp.ge.s32.totalorder %s13_s16, 6   ;;  %s6060_s13 = smov %s4871_s15 }
 0x248   : > { %s6061_s14 = smov %s6064_s17  ;;  %s6062_s15 = smov %s6068_s18 }
 0x249   :  { %12 = sbr.rel (!%p10_p7) target bundleno = 3 (0x3), region = 73 }

</bundles_post_ra>
